<compile_context>
chip_gen: v5e
topology: v5e:2x2
jax: 0.10.0
libtpu: 0.0.40
codegen_flags: <defaults>
</compile_context>

<pallas_src>
import jax
import jax.numpy as jnp
from jax.experimental import pallas as pl
from jax.experimental.pallas import tpu as pltpu


LANE = 128     # TPU lane width (last-dim tile)
SUBLANE = 8    # f32 sublane tile (second-to-last dim)


def _round_up(x, m):
    return (x + m - 1) // m * m


# ---------------------------------------------------------------------------
# Pallas kernel
# ---------------------------------------------------------------------------
def rnn_shakespeare_kernel(
    xproj_ref,   # (T*Bp, Gp)  precomputed layer-1 input projection (+ bias), time-major
    whh1_ref,    # (H, Gp)     layer-1 recurrent weights (gates packed, i|f|g|o)
    w2_ref,      # (2H, Gp)    layer-2 [W_ih^T ; W_hh^T] stacked (merged matmul)
    b2_ref,      # (1, Gp)     layer-2 bias (b_ih + b_hh)
    wfc_ref,     # (H, Cp)     classifier weights (transposed, lane-padded)
    bfc_ref,     # (1, Cp)     classifier bias (lane-padded)
    out_ref,     # (Bp, Cp)    logits (padded)
):
    TB, _ = xproj_ref.shape
    Bp = out_ref.shape[0]
    T = TB // Bp
    H = whh1_ref.shape[0]

    def cell(gates, c):
        # Activate the full packed-gate vreg once per nonlinearity (EUP),
        # then slice the H-wide gate groups (torch order: i, f, g, o).
        sg = jax.nn.sigmoid(gates)
        th = jnp.tanh(gates)
        i = sg[:, 0 * H:1 * H]
        f = sg[:, 1 * H:2 * H]
        g = th[:, 2 * H:3 * H]
        o = sg[:, 3 * H:4 * H]
        c_new = f * c + i * g
        h_new = o * jnp.tanh(c_new)
        return h_new, c_new

    zeros = jnp.zeros((Bp, H), jnp.float32)
    h1, c1, h2, c2 = zeros, zeros, zeros, zeros

    # Fully unrolled time loop (T small & static).  Layer-1 work for step t+1
    # is independent of layer-2 activations for step t, so the LLO scheduler
    # can overlap the dependent MXU/EUP chains of adjacent steps.
    for t in range(T):
        # Layer 1: input projection (incl. bias) was precomputed in the
        # wrapper; only the (Bp,H)x(H,4H) recurrent matmul is on the chain.
        g1 = xproj_ref[t * Bp:(t + 1) * Bp, :] + jnp.dot(
            h1, whh1_ref[...], preferred_element_type=jnp.float32)
        h1, c1 = cell(g1, c1)

        # Layer 2: single merged K = 2H matmul (input + recurrent weights
        # stacked), one MXU pass per step instead of two.
        hcat = jnp.concatenate([h1, h2], axis=1)            # (Bp, 2H)
        g2 = jnp.dot(hcat, w2_ref[...],
                     preferred_element_type=jnp.float32) + b2_ref[...]
        h2, c2 = cell(g2, c2)

    # Classifier on the last hidden state of layer 2 (lane-dense Cp output).
    out_ref[...] = (
        jnp.dot(h2, wfc_ref[...], preferred_element_type=jnp.float32)
        + bfc_ref[...]
    )


# ---------------------------------------------------------------------------
# One-time parameter preparation (hoisted out of the per-call path)
# ---------------------------------------------------------------------------
def prepare_params(params):
    """Re-layout PyTorch-shaped params into kernel operands.  Call ONCE."""
    H = params["w_hh_l0"].shape[1]
    C = params["w_fc"].shape[0]
    Gp = _round_up(4 * H, LANE)     # packed gate width (4H = 128 for H = 32)
    Cp = _round_up(C, LANE)

    def pad_cols(a, width):
        a = a.astype(jnp.float32)
        return jnp.pad(a, ((0, 0), (0, width - a.shape[1])))

    # Fused Embedding x W_ih_l0^T (+ layer-1 bias): one (C, 4H) lookup table.
    emb_proj = (
        params["embedding"].astype(jnp.float32)
        @ params["w_ih_l0"].T.astype(jnp.float32)
        + params["b_ih_l0"] + params["b_hh_l0"]
    )                                                           # (C, 4H)

    return {
        "emb_proj": pad_cols(emb_proj, Gp),                                   # (C, Gp)
        "whh1": pad_cols(params["w_hh_l0"].T, Gp),                            # (H, Gp)
        "w2": pad_cols(jnp.concatenate(
            [params["w_ih_l1"].T, params["w_hh_l1"].T], axis=0), Gp),         # (2H, Gp)
        "b2": pad_cols((params["b_ih_l1"] + params["b_hh_l1"])[None, :], Gp), # (1, Gp)
        "wfc": pad_cols(params["w_fc"].T, Cp),                                # (H, Cp)
        "bfc": pad_cols(params["b_fc"][None, :], Cp),                         # (1, Cp)
    }


# ---------------------------------------------------------------------------
# Forward wrapper
# ---------------------------------------------------------------------------
def rnn_shakespeare_forward(tokens, prepped):
    """tokens: int32 [B, T].  prepped: output of prepare_params.
    Returns logits [B, num_classes] (float32)."""
    emb_proj = prepped["emb_proj"]                 # (C, Gp)
    C, Gp = emb_proj.shape
    H, Cp = prepped["wfc"].shape
    B, T = tokens.shape
    Bp = _round_up(B, SUBLANE)

    # Fused embedding + layer-1 input projection == one row gather (JAX glue),
    # laid out time-major with the batch padded to a sublane multiple.
    xproj = jnp.take(emb_proj, tokens, axis=0)                  # (B, T, Gp)
    xproj = jnp.transpose(xproj, (1, 0, 2))                     # (T, B, Gp)
    xproj = jnp.pad(xproj, ((0, 0), (0, Bp - B), (0, 0)))       # (T, Bp, Gp)
    xproj = xproj.reshape(T * Bp, Gp)

    kernel_inputs = (xproj, prepped["whh1"], prepped["w2"], prepped["b2"],
                     prepped["wfc"], prepped["bfc"])

    # Advisory cost estimate so XLA schedules the surrounding glue sensibly.
    flops = T * (2 * Bp * H * Gp + 2 * Bp * (2 * H) * Gp) + 2 * Bp * H * Cp
    transcendentals = T * 2 * (2 * Bp * Gp + Bp * H)
    bytes_accessed = (
        sum(int(a.size) * a.dtype.itemsize for a in kernel_inputs)
        + Bp * Cp * 4
    )

    vmem_spec = pl.BlockSpec(memory_space=pltpu.MemorySpace.VMEM)
    out = pl.pallas_call(
        rnn_shakespeare_kernel,
        out_shape=jax.ShapeDtypeStruct((Bp, Cp), jnp.float32),
        in_specs=[vmem_spec] * len(kernel_inputs),
        out_specs=vmem_spec,
        cost_estimate=pl.CostEstimate(
            flops=flops,
            transcendentals=transcendentals,
            bytes_accessed=bytes_accessed,
        ),
    )(*kernel_inputs)

    return out[:B, :C]


# ---------------------------------------------------------------------------
# Deterministic synthetic parameters (PyTorch module shapes)
# ---------------------------------------------------------------------------
def init_params(key, num_classes, n_hidden, emb_dim=8):
    ks = jax.random.split(key, 11)
    s = 0.1
    H, E, C = n_hidden, emb_dim, num_classes

    def rnd(k, shape):
        return (s * jax.random.normal(k, shape)).astype(jnp.float32)

    return {
        "embedding": rnd(ks[0], (C, E)),
        # nn.LSTM layer 0 (input size E)
        "w_ih_l0": rnd(ks[1], (4 * H, E)),
        "w_hh_l0": rnd(ks[2], (4 * H, H)),
        "b_ih_l0": rnd(ks[3], (4 * H,)),
        "b_hh_l0": rnd(ks[4], (4 * H,)),
        # nn.LSTM layer 1 (input size H)
        "w_ih_l1": rnd(ks[5], (4 * H, H)),
        "w_hh_l1": rnd(ks[6], (4 * H, H)),
        "b_ih_l1": rnd(ks[7], (4 * H,)),
        "b_hh_l1": rnd(ks[8], (4 * H,)),
        # nn.Linear(H, C)
        "w_fc": rnd(ks[9], (C, H)),
        "b_fc": rnd(ks[10], (C,)),
    }


# ---------------------------------------------------------------------------
# Pure-JAX reference (torch.nn.LSTM math, gate order i, f, g, o)
# ---------------------------------------------------------------------------
def reference_forward(tokens, params):
    emb = jnp.take(params["embedding"], tokens, axis=0).astype(jnp.float32)
    B, T, _ = emb.shape
    H = params["w_hh_l0"].shape[1]

    def cell(x_t, h, c, w_ih, w_hh, b_ih, b_hh):
        g = x_t @ w_ih.T + h @ w_hh.T + b_ih + b_hh
        i = jax.nn.sigmoid(g[:, 0 * H:1 * H])
        f = jax.nn.sigmoid(g[:, 1 * H:2 * H])
        gg = jnp.tanh(g[:, 2 * H:3 * H])
        o = jax.nn.sigmoid(g[:, 3 * H:4 * H])
        c = f * c + i * gg
        h = o * jnp.tanh(c)
        return h, c

    h1 = c1 = h2 = c2 = jnp.zeros((B, H), jnp.float32)
    for t in range(T):
        x_t = emb[:, t, :]
        h1, c1 = cell(x_t, h1, c1, params["w_ih_l0"], params["w_hh_l0"],
                      params["b_ih_l0"], params["b_hh_l0"])
        h2, c2 = cell(h1, h2, c2, params["w_ih_l1"], params["w_hh_l1"],
                      params["b_ih_l1"], params["b_hh_l1"])
    return h2 @ params["w_fc"].T + params["b_fc"]


if __name__ == "__main__":
    num_classes = 80   # Shakespeare character vocabulary size
    n_hidden = 32
    batch = 2
    seq_len = 8

    key = jax.random.PRNGKey(0)
    k_param, k_tok = jax.random.split(key)
    params = init_params(k_param, num_classes, n_hidden)
    tokens = jax.random.randint(
        k_tok, (batch, seq_len), 0, num_classes, dtype=jnp.int32)

    # One-time parameter re-layout (hoisted out of the per-call path).
    prepped = prepare_params(params)

    fwd = jax.jit(rnn_shakespeare_forward)
    logits = jax.block_until_ready(fwd(tokens, prepped))

    ref = reference_forward(tokens, params)
    assert logits.shape == (batch, num_classes)
    assert jnp.allclose(logits, ref, rtol=1e-4, atol=1e-4), "mismatch vs reference"

    print("KERNEL_OK")
</pallas_src>

<mosaic_0001>
module attributes {stable_mosaic.version = 11 : i64} {
  func.func @rnn_shakespeare_kernel(%arg0: memref<64x128xf32, #tpu.memory_space<vmem>>, %arg1: memref<32x128xf32, #tpu.memory_space<vmem>>, %arg2: memref<64x128xf32, #tpu.memory_space<vmem>>, %arg3: memref<1x128xf32, #tpu.memory_space<vmem>>, %arg4: memref<32x128xf32, #tpu.memory_space<vmem>>, %arg5: memref<1x128xf32, #tpu.memory_space<vmem>>, %arg6: memref<8x128xf32, #tpu.memory_space<vmem>>) attributes {dimension_semantics = [], scalar_prefetch = 0 : i64, scratch_operands = 0 : i64, tpu.core_type = #tpu.core_type<tc>} {
    %cst = arith.constant 0.000000e+00 : f32
    %0 = vector.broadcast %cst : f32 to vector<8x32xf32>
    %c0 = arith.constant 0 : index
    %c0_0 = arith.constant 0 : index
    %1 = vector.load %arg0[%c0, %c0_0] : memref<64x128xf32, #tpu.memory_space<vmem>>, vector<8x128xf32>
    %c0_1 = arith.constant 0 : index
    %c0_2 = arith.constant 0 : index
    %2 = vector.load %arg1[%c0_1, %c0_2] : memref<32x128xf32, #tpu.memory_space<vmem>>, vector<32x128xf32>
    %cst_3 = arith.constant dense<0.000000e+00> : vector<8x128xf32>
    %3 = tpu.matmul %0, %2, %cst_3 {dimension_numbers = #tpu.dot_dimension_numbers<[1], [0], [0], [1], [0, 0, 1, 1], [], []>} : vector<8x32xf32>, vector<32x128xf32>, vector<8x128xf32> -> vector<8x128xf32>
    %4 = arith.addf %1, %3 : vector<8x128xf32>
    %5 = arith.negf %4 : vector<8x128xf32>
    %6 = math.exp %5 : vector<8x128xf32>
    %cst_4 = arith.constant 1.000000e+00 : f32
    %7 = vector.broadcast %cst_4 : f32 to vector<8x128xf32>
    %8 = arith.addf %7, %6 : vector<8x128xf32>
    %9 = arith.divf %7, %8 : vector<8x128xf32>
    %10 = math.tanh %4 : vector<8x128xf32>
    %11 = vector.extract_strided_slice %9 {offsets = [0, 0], sizes = [8, 32], strides = [1, 1]} : vector<8x128xf32> to vector<8x32xf32>
    %12 = vector.extract_strided_slice %9 {offsets = [0, 32], sizes = [8, 32], strides = [1, 1]} : vector<8x128xf32> to vector<8x32xf32>
    %13 = vector.extract_strided_slice %10 {offsets = [0, 64], sizes = [8, 32], strides = [1, 1]} : vector<8x128xf32> to vector<8x32xf32>
    %14 = vector.extract_strided_slice %9 {offsets = [0, 96], sizes = [8, 32], strides = [1, 1]} : vector<8x128xf32> to vector<8x32xf32>
    %15 = arith.mulf %12, %0 : vector<8x32xf32>
    %16 = arith.mulf %11, %13 : vector<8x32xf32>
    %17 = arith.addf %15, %16 : vector<8x32xf32>
    %18 = math.tanh %17 : vector<8x32xf32>
    %19 = arith.mulf %14, %18 : vector<8x32xf32>
    %20 = tpu.concatenate %19, %0 in 1 : vector<8x32xf32>, vector<8x32xf32> -> vector<8x64xf32>
    %c0_5 = arith.constant 0 : index
    %c0_6 = arith.constant 0 : index
    %21 = vector.load %arg2[%c0_5, %c0_6] : memref<64x128xf32, #tpu.memory_space<vmem>>, vector<64x128xf32>
    %cst_7 = arith.constant dense<0.000000e+00> : vector<8x128xf32>
    %22 = tpu.matmul %20, %21, %cst_7 {dimension_numbers = #tpu.dot_dimension_numbers<[1], [0], [0], [1], [0, 0, 1, 1], [], []>} : vector<8x64xf32>, vector<64x128xf32>, vector<8x128xf32> -> vector<8x128xf32>
    %c0_8 = arith.constant 0 : index
    %c0_9 = arith.constant 0 : index
    %23 = vector.load %arg3[%c0_8, %c0_9] : memref<1x128xf32, #tpu.memory_space<vmem>>, vector<1x128xf32>
    %24 = vector.broadcast %23 : vector<1x128xf32> to vector<8x128xf32>
    %25 = arith.addf %22, %24 : vector<8x128xf32>
    %26 = arith.negf %25 : vector<8x128xf32>
    %27 = math.exp %26 : vector<8x128xf32>
    %cst_10 = arith.constant 1.000000e+00 : f32
    %28 = vector.broadcast %cst_10 : f32 to vector<8x128xf32>
    %29 = arith.addf %28, %27 : vector<8x128xf32>
    %30 = arith.divf %28, %29 : vector<8x128xf32>
    %31 = math.tanh %25 : vector<8x128xf32>
    %32 = vector.extract_strided_slice %30 {offsets = [0, 0], sizes = [8, 32], strides = [1, 1]} : vector<8x128xf32> to vector<8x32xf32>
    %33 = vector.extract_strided_slice %30 {offsets = [0, 32], sizes = [8, 32], strides = [1, 1]} : vector<8x128xf32> to vector<8x32xf32>
    %34 = vector.extract_strided_slice %31 {offsets = [0, 64], sizes = [8, 32], strides = [1, 1]} : vector<8x128xf32> to vector<8x32xf32>
    %35 = vector.extract_strided_slice %30 {offsets = [0, 96], sizes = [8, 32], strides = [1, 1]} : vector<8x128xf32> to vector<8x32xf32>
    %36 = arith.mulf %33, %0 : vector<8x32xf32>
    %37 = arith.mulf %32, %34 : vector<8x32xf32>
    %38 = arith.addf %36, %37 : vector<8x32xf32>
    %39 = math.tanh %38 : vector<8x32xf32>
    %40 = arith.mulf %35, %39 : vector<8x32xf32>
    %c8 = arith.constant 8 : index
    %c0_11 = arith.constant 0 : index
    %41 = vector.load %arg0[%c8, %c0_11] : memref<64x128xf32, #tpu.memory_space<vmem>>, vector<8x128xf32>
    %c0_12 = arith.constant 0 : index
    %c0_13 = arith.constant 0 : index
    %42 = vector.load %arg1[%c0_12, %c0_13] : memref<32x128xf32, #tpu.memory_space<vmem>>, vector<32x128xf32>
    %cst_14 = arith.constant dense<0.000000e+00> : vector<8x128xf32>
    %43 = tpu.matmul %19, %42, %cst_14 {dimension_numbers = #tpu.dot_dimension_numbers<[1], [0], [0], [1], [0, 0, 1, 1], [], []>} : vector<8x32xf32>, vector<32x128xf32>, vector<8x128xf32> -> vector<8x128xf32>
    %44 = arith.addf %41, %43 : vector<8x128xf32>
    %45 = arith.negf %44 : vector<8x128xf32>
    %46 = math.exp %45 : vector<8x128xf32>
    %cst_15 = arith.constant 1.000000e+00 : f32
    %47 = vector.broadcast %cst_15 : f32 to vector<8x128xf32>
    %48 = arith.addf %47, %46 : vector<8x128xf32>
    %49 = arith.divf %47, %48 : vector<8x128xf32>
    %50 = math.tanh %44 : vector<8x128xf32>
    %51 = vector.extract_strided_slice %49 {offsets = [0, 0], sizes = [8, 32], strides = [1, 1]} : vector<8x128xf32> to vector<8x32xf32>
    %52 = vector.extract_strided_slice %49 {offsets = [0, 32], sizes = [8, 32], strides = [1, 1]} : vector<8x128xf32> to vector<8x32xf32>
    %53 = vector.extract_strided_slice %50 {offsets = [0, 64], sizes = [8, 32], strides = [1, 1]} : vector<8x128xf32> to vector<8x32xf32>
    %54 = vector.extract_strided_slice %49 {offsets = [0, 96], sizes = [8, 32], strides = [1, 1]} : vector<8x128xf32> to vector<8x32xf32>
    %55 = arith.mulf %52, %17 : vector<8x32xf32>
    %56 = arith.mulf %51, %53 : vector<8x32xf32>
    %57 = arith.addf %55, %56 : vector<8x32xf32>
    %58 = math.tanh %57 : vector<8x32xf32>
    %59 = arith.mulf %54, %58 : vector<8x32xf32>
    %60 = tpu.concatenate %59, %40 in 1 : vector<8x32xf32>, vector<8x32xf32> -> vector<8x64xf32>
    %c0_16 = arith.constant 0 : index
    %c0_17 = arith.constant 0 : index
    %61 = vector.load %arg2[%c0_16, %c0_17] : memref<64x128xf32, #tpu.memory_space<vmem>>, vector<64x128xf32>
    %cst_18 = arith.constant dense<0.000000e+00> : vector<8x128xf32>
    %62 = tpu.matmul %60, %61, %cst_18 {dimension_numbers = #tpu.dot_dimension_numbers<[1], [0], [0], [1], [0, 0, 1, 1], [], []>} : vector<8x64xf32>, vector<64x128xf32>, vector<8x128xf32> -> vector<8x128xf32>
    %c0_19 = arith.constant 0 : index
    %c0_20 = arith.constant 0 : index
    %63 = vector.load %arg3[%c0_19, %c0_20] : memref<1x128xf32, #tpu.memory_space<vmem>>, vector<1x128xf32>
    %64 = vector.broadcast %63 : vector<1x128xf32> to vector<8x128xf32>
    %65 = arith.addf %62, %64 : vector<8x128xf32>
    %66 = arith.negf %65 : vector<8x128xf32>
    %67 = math.exp %66 : vector<8x128xf32>
    %cst_21 = arith.constant 1.000000e+00 : f32
    %68 = vector.broadcast %cst_21 : f32 to vector<8x128xf32>
    %69 = arith.addf %68, %67 : vector<8x128xf32>
    %70 = arith.divf %68, %69 : vector<8x128xf32>
    %71 = math.tanh %65 : vector<8x128xf32>
    %72 = vector.extract_strided_slice %70 {offsets = [0, 0], sizes = [8, 32], strides = [1, 1]} : vector<8x128xf32> to vector<8x32xf32>
    %73 = vector.extract_strided_slice %70 {offsets = [0, 32], sizes = [8, 32], strides = [1, 1]} : vector<8x128xf32> to vector<8x32xf32>
    %74 = vector.extract_strided_slice %71 {offsets = [0, 64], sizes = [8, 32], strides = [1, 1]} : vector<8x128xf32> to vector<8x32xf32>
    %75 = vector.extract_strided_slice %70 {offsets = [0, 96], sizes = [8, 32], strides = [1, 1]} : vector<8x128xf32> to vector<8x32xf32>
    %76 = arith.mulf %73, %38 : vector<8x32xf32>
    %77 = arith.mulf %72, %74 : vector<8x32xf32>
    %78 = arith.addf %76, %77 : vector<8x32xf32>
    %79 = math.tanh %78 : vector<8x32xf32>
    %80 = arith.mulf %75, %79 : vector<8x32xf32>
    %c16 = arith.constant 16 : index
    %c0_22 = arith.constant 0 : index
    %81 = vector.load %arg0[%c16, %c0_22] : memref<64x128xf32, #tpu.memory_space<vmem>>, vector<8x128xf32>
    %c0_23 = arith.constant 0 : index
    %c0_24 = arith.constant 0 : index
    %82 = vector.load %arg1[%c0_23, %c0_24] : memref<32x128xf32, #tpu.memory_space<vmem>>, vector<32x128xf32>
    %cst_25 = arith.constant dense<0.000000e+00> : vector<8x128xf32>
    %83 = tpu.matmul %59, %82, %cst_25 {dimension_numbers = #tpu.dot_dimension_numbers<[1], [0], [0], [1], [0, 0, 1, 1], [], []>} : vector<8x32xf32>, vector<32x128xf32>, vector<8x128xf32> -> vector<8x128xf32>
    %84 = arith.addf %81, %83 : vector<8x128xf32>
    %85 = arith.negf %84 : vector<8x128xf32>
    %86 = math.exp %85 : vector<8x128xf32>
    %cst_26 = arith.constant 1.000000e+00 : f32
    %87 = vector.broadcast %cst_26 : f32 to vector<8x128xf32>
    %88 = arith.addf %87, %86 : vector<8x128xf32>
    %89 = arith.divf %87, %88 : vector<8x128xf32>
    %90 = math.tanh %84 : vector<8x128xf32>
    %91 = vector.extract_strided_slice %89 {offsets = [0, 0], sizes = [8, 32], strides = [1, 1]} : vector<8x128xf32> to vector<8x32xf32>
    %92 = vector.extract_strided_slice %89 {offsets = [0, 32], sizes = [8, 32], strides = [1, 1]} : vector<8x128xf32> to vector<8x32xf32>
    %93 = vector.extract_strided_slice %90 {offsets = [0, 64], sizes = [8, 32], strides = [1, 1]} : vector<8x128xf32> to vector<8x32xf32>
    %94 = vector.extract_strided_slice %89 {offsets = [0, 96], sizes = [8, 32], strides = [1, 1]} : vector<8x128xf32> to vector<8x32xf32>
    %95 = arith.mulf %92, %57 : vector<8x32xf32>
    %96 = arith.mulf %91, %93 : vector<8x32xf32>
    %97 = arith.addf %95, %96 : vector<8x32xf32>
    %98 = math.tanh %97 : vector<8x32xf32>
    %99 = arith.mulf %94, %98 : vector<8x32xf32>
    %100 = tpu.concatenate %99, %80 in 1 : vector<8x32xf32>, vector<8x32xf32> -> vector<8x64xf32>
    %c0_27 = arith.constant 0 : index
    %c0_28 = arith.constant 0 : index
    %101 = vector.load %arg2[%c0_27, %c0_28] : memref<64x128xf32, #tpu.memory_space<vmem>>, vector<64x128xf32>
    %cst_29 = arith.constant dense<0.000000e+00> : vector<8x128xf32>
    %102 = tpu.matmul %100, %101, %cst_29 {dimension_numbers = #tpu.dot_dimension_numbers<[1], [0], [0], [1], [0, 0, 1, 1], [], []>} : vector<8x64xf32>, vector<64x128xf32>, vector<8x128xf32> -> vector<8x128xf32>
    %c0_30 = arith.constant 0 : index
    %c0_31 = arith.constant 0 : index
    %103 = vector.load %arg3[%c0_30, %c0_31] : memref<1x128xf32, #tpu.memory_space<vmem>>, vector<1x128xf32>
    %104 = vector.broadcast %103 : vector<1x128xf32> to vector<8x128xf32>
    %105 = arith.addf %102, %104 : vector<8x128xf32>
    %106 = arith.negf %105 : vector<8x128xf32>
    %107 = math.exp %106 : vector<8x128xf32>
    %cst_32 = arith.constant 1.000000e+00 : f32
    %108 = vector.broadcast %cst_32 : f32 to vector<8x128xf32>
    %109 = arith.addf %108, %107 : vector<8x128xf32>
    %110 = arith.divf %108, %109 : vector<8x128xf32>
    %111 = math.tanh %105 : vector<8x128xf32>
    %112 = vector.extract_strided_slice %110 {offsets = [0, 0], sizes = [8, 32], strides = [1, 1]} : vector<8x128xf32> to vector<8x32xf32>
    %113 = vector.extract_strided_slice %110 {offsets = [0, 32], sizes = [8, 32], strides = [1, 1]} : vector<8x128xf32> to vector<8x32xf32>
    %114 = vector.extract_strided_slice %111 {offsets = [0, 64], sizes = [8, 32], strides = [1, 1]} : vector<8x128xf32> to vector<8x32xf32>
    %115 = vector.extract_strided_slice %110 {offsets = [0, 96], sizes = [8, 32], strides = [1, 1]} : vector<8x128xf32> to vector<8x32xf32>
    %116 = arith.mulf %113, %78 : vector<8x32xf32>
    %117 = arith.mulf %112, %114 : vector<8x32xf32>
    %118 = arith.addf %116, %117 : vector<8x32xf32>
    %119 = math.tanh %118 : vector<8x32xf32>
    %120 = arith.mulf %115, %119 : vector<8x32xf32>
    %c24 = arith.constant 24 : index
    %c0_33 = arith.constant 0 : index
    %121 = vector.load %arg0[%c24, %c0_33] : memref<64x128xf32, #tpu.memory_space<vmem>>, vector<8x128xf32>
    %c0_34 = arith.constant 0 : index
    %c0_35 = arith.constant 0 : index
    %122 = vector.load %arg1[%c0_34, %c0_35] : memref<32x128xf32, #tpu.memory_space<vmem>>, vector<32x128xf32>
    %cst_36 = arith.constant dense<0.000000e+00> : vector<8x128xf32>
    %123 = tpu.matmul %99, %122, %cst_36 {dimension_numbers = #tpu.dot_dimension_numbers<[1], [0], [0], [1], [0, 0, 1, 1], [], []>} : vector<8x32xf32>, vector<32x128xf32>, vector<8x128xf32> -> vector<8x128xf32>
    %124 = arith.addf %121, %123 : vector<8x128xf32>
    %125 = arith.negf %124 : vector<8x128xf32>
    %126 = math.exp %125 : vector<8x128xf32>
    %cst_37 = arith.constant 1.000000e+00 : f32
    %127 = vector.broadcast %cst_37 : f32 to vector<8x128xf32>
    %128 = arith.addf %127, %126 : vector<8x128xf32>
    %129 = arith.divf %127, %128 : vector<8x128xf32>
    %130 = math.tanh %124 : vector<8x128xf32>
    %131 = vector.extract_strided_slice %129 {offsets = [0, 0], sizes = [8, 32], strides = [1, 1]} : vector<8x128xf32> to vector<8x32xf32>
    %132 = vector.extract_strided_slice %129 {offsets = [0, 32], sizes = [8, 32], strides = [1, 1]} : vector<8x128xf32> to vector<8x32xf32>
    %133 = vector.extract_strided_slice %130 {offsets = [0, 64], sizes = [8, 32], strides = [1, 1]} : vector<8x128xf32> to vector<8x32xf32>
    %134 = vector.extract_strided_slice %129 {offsets = [0, 96], sizes = [8, 32], strides = [1, 1]} : vector<8x128xf32> to vector<8x32xf32>
    %135 = arith.mulf %132, %97 : vector<8x32xf32>
    %136 = arith.mulf %131, %133 : vector<8x32xf32>
    %137 = arith.addf %135, %136 : vector<8x32xf32>
    %138 = math.tanh %137 : vector<8x32xf32>
    %139 = arith.mulf %134, %138 : vector<8x32xf32>
    %140 = tpu.concatenate %139, %120 in 1 : vector<8x32xf32>, vector<8x32xf32> -> vector<8x64xf32>
    %c0_38 = arith.constant 0 : index
    %c0_39 = arith.constant 0 : index
    %141 = vector.load %arg2[%c0_38, %c0_39] : memref<64x128xf32, #tpu.memory_space<vmem>>, vector<64x128xf32>
    %cst_40 = arith.constant dense<0.000000e+00> : vector<8x128xf32>
    %142 = tpu.matmul %140, %141, %cst_40 {dimension_numbers = #tpu.dot_dimension_numbers<[1], [0], [0], [1], [0, 0, 1, 1], [], []>} : vector<8x64xf32>, vector<64x128xf32>, vector<8x128xf32> -> vector<8x128xf32>
    %c0_41 = arith.constant 0 : index
    %c0_42 = arith.constant 0 : index
    %143 = vector.load %arg3[%c0_41, %c0_42] : memref<1x128xf32, #tpu.memory_space<vmem>>, vector<1x128xf32>
    %144 = vector.broadcast %143 : vector<1x128xf32> to vector<8x128xf32>
    %145 = arith.addf %142, %144 : vector<8x128xf32>
    %146 = arith.negf %145 : vector<8x128xf32>
    %147 = math.exp %146 : vector<8x128xf32>
    %cst_43 = arith.constant 1.000000e+00 : f32
    %148 = vector.broadcast %cst_43 : f32 to vector<8x128xf32>
    %149 = arith.addf %148, %147 : vector<8x128xf32>
    %150 = arith.divf %148, %149 : vector<8x128xf32>
    %151 = math.tanh %145 : vector<8x128xf32>
    %152 = vector.extract_strided_slice %150 {offsets = [0, 0], sizes = [8, 32], strides = [1, 1]} : vector<8x128xf32> to vector<8x32xf32>
    %153 = vector.extract_strided_slice %150 {offsets = [0, 32], sizes = [8, 32], strides = [1, 1]} : vector<8x128xf32> to vector<8x32xf32>
    %154 = vector.extract_strided_slice %151 {offsets = [0, 64], sizes = [8, 32], strides = [1, 1]} : vector<8x128xf32> to vector<8x32xf32>
    %155 = vector.extract_strided_slice %150 {offsets = [0, 96], sizes = [8, 32], strides = [1, 1]} : vector<8x128xf32> to vector<8x32xf32>
    %156 = arith.mulf %153, %118 : vector<8x32xf32>
    %157 = arith.mulf %152, %154 : vector<8x32xf32>
    %158 = arith.addf %156, %157 : vector<8x32xf32>
    %159 = math.tanh %158 : vector<8x32xf32>
    %160 = arith.mulf %155, %159 : vector<8x32xf32>
    %c32 = arith.constant 32 : index
    %c0_44 = arith.constant 0 : index
    %161 = vector.load %arg0[%c32, %c0_44] : memref<64x128xf32, #tpu.memory_space<vmem>>, vector<8x128xf32>
    %c0_45 = arith.constant 0 : index
    %c0_46 = arith.constant 0 : index
    %162 = vector.load %arg1[%c0_45, %c0_46] : memref<32x128xf32, #tpu.memory_space<vmem>>, vector<32x128xf32>
    %cst_47 = arith.constant dense<0.000000e+00> : vector<8x128xf32>
    %163 = tpu.matmul %139, %162, %cst_47 {dimension_numbers = #tpu.dot_dimension_numbers<[1], [0], [0], [1], [0, 0, 1, 1], [], []>} : vector<8x32xf32>, vector<32x128xf32>, vector<8x128xf32> -> vector<8x128xf32>
    %164 = arith.addf %161, %163 : vector<8x128xf32>
    %165 = arith.negf %164 : vector<8x128xf32>
    %166 = math.exp %165 : vector<8x128xf32>
    %cst_48 = arith.constant 1.000000e+00 : f32
    %167 = vector.broadcast %cst_48 : f32 to vector<8x128xf32>
    %168 = arith.addf %167, %166 : vector<8x128xf32>
    %169 = arith.divf %167, %168 : vector<8x128xf32>
    %170 = math.tanh %164 : vector<8x128xf32>
    %171 = vector.extract_strided_slice %169 {offsets = [0, 0], sizes = [8, 32], strides = [1, 1]} : vector<8x128xf32> to vector<8x32xf32>
    %172 = vector.extract_strided_slice %169 {offsets = [0, 32], sizes = [8, 32], strides = [1, 1]} : vector<8x128xf32> to vector<8x32xf32>
    %173 = vector.extract_strided_slice %170 {offsets = [0, 64], sizes = [8, 32], strides = [1, 1]} : vector<8x128xf32> to vector<8x32xf32>
    %174 = vector.extract_strided_slice %169 {offsets = [0, 96], sizes = [8, 32], strides = [1, 1]} : vector<8x128xf32> to vector<8x32xf32>
    %175 = arith.mulf %172, %137 : vector<8x32xf32>
    %176 = arith.mulf %171, %173 : vector<8x32xf32>
    %177 = arith.addf %175, %176 : vector<8x32xf32>
    %178 = math.tanh %177 : vector<8x32xf32>
    %179 = arith.mulf %174, %178 : vector<8x32xf32>
    %180 = tpu.concatenate %179, %160 in 1 : vector<8x32xf32>, vector<8x32xf32> -> vector<8x64xf32>
    %c0_49 = arith.constant 0 : index
    %c0_50 = arith.constant 0 : index
    %181 = vector.load %arg2[%c0_49, %c0_50] : memref<64x128xf32, #tpu.memory_space<vmem>>, vector<64x128xf32>
    %cst_51 = arith.constant dense<0.000000e+00> : vector<8x128xf32>
    %182 = tpu.matmul %180, %181, %cst_51 {dimension_numbers = #tpu.dot_dimension_numbers<[1], [0], [0], [1], [0, 0, 1, 1], [], []>} : vector<8x64xf32>, vector<64x128xf32>, vector<8x128xf32> -> vector<8x128xf32>
    %c0_52 = arith.constant 0 : index
    %c0_53 = arith.constant 0 : index
    %183 = vector.load %arg3[%c0_52, %c0_53] : memref<1x128xf32, #tpu.memory_space<vmem>>, vector<1x128xf32>
    %184 = vector.broadcast %183 : vector<1x128xf32> to vector<8x128xf32>
    %185 = arith.addf %182, %184 : vector<8x128xf32>
    %186 = arith.negf %185 : vector<8x128xf32>
    %187 = math.exp %186 : vector<8x128xf32>
    %cst_54 = arith.constant 1.000000e+00 : f32
    %188 = vector.broadcast %cst_54 : f32 to vector<8x128xf32>
    %189 = arith.addf %188, %187 : vector<8x128xf32>
    %190 = arith.divf %188, %189 : vector<8x128xf32>
    %191 = math.tanh %185 : vector<8x128xf32>
    %192 = vector.extract_strided_slice %190 {offsets = [0, 0], sizes = [8, 32], strides = [1, 1]} : vector<8x128xf32> to vector<8x32xf32>
    %193 = vector.extract_strided_slice %190 {offsets = [0, 32], sizes = [8, 32], strides = [1, 1]} : vector<8x128xf32> to vector<8x32xf32>
    %194 = vector.extract_strided_slice %191 {offsets = [0, 64], sizes = [8, 32], strides = [1, 1]} : vector<8x128xf32> to vector<8x32xf32>
    %195 = vector.extract_strided_slice %190 {offsets = [0, 96], sizes = [8, 32], strides = [1, 1]} : vector<8x128xf32> to vector<8x32xf32>
    %196 = arith.mulf %193, %158 : vector<8x32xf32>
    %197 = arith.mulf %192, %194 : vector<8x32xf32>
    %198 = arith.addf %196, %197 : vector<8x32xf32>
    %199 = math.tanh %198 : vector<8x32xf32>
    %200 = arith.mulf %195, %199 : vector<8x32xf32>
    %c40 = arith.constant 40 : index
    %c0_55 = arith.constant 0 : index
    %201 = vector.load %arg0[%c40, %c0_55] : memref<64x128xf32, #tpu.memory_space<vmem>>, vector<8x128xf32>
    %c0_56 = arith.constant 0 : index
    %c0_57 = arith.constant 0 : index
    %202 = vector.load %arg1[%c0_56, %c0_57] : memref<32x128xf32, #tpu.memory_space<vmem>>, vector<32x128xf32>
    %cst_58 = arith.constant dense<0.000000e+00> : vector<8x128xf32>
    %203 = tpu.matmul %179, %202, %cst_58 {dimension_numbers = #tpu.dot_dimension_numbers<[1], [0], [0], [1], [0, 0, 1, 1], [], []>} : vector<8x32xf32>, vector<32x128xf32>, vector<8x128xf32> -> vector<8x128xf32>
    %204 = arith.addf %201, %203 : vector<8x128xf32>
    %205 = arith.negf %204 : vector<8x128xf32>
    %206 = math.exp %205 : vector<8x128xf32>
    %cst_59 = arith.constant 1.000000e+00 : f32
    %207 = vector.broadcast %cst_59 : f32 to vector<8x128xf32>
    %208 = arith.addf %207, %206 : vector<8x128xf32>
    %209 = arith.divf %207, %208 : vector<8x128xf32>
    %210 = math.tanh %204 : vector<8x128xf32>
    %211 = vector.extract_strided_slice %209 {offsets = [0, 0], sizes = [8, 32], strides = [1, 1]} : vector<8x128xf32> to vector<8x32xf32>
    %212 = vector.extract_strided_slice %209 {offsets = [0, 32], sizes = [8, 32], strides = [1, 1]} : vector<8x128xf32> to vector<8x32xf32>
    %213 = vector.extract_strided_slice %210 {offsets = [0, 64], sizes = [8, 32], strides = [1, 1]} : vector<8x128xf32> to vector<8x32xf32>
    %214 = vector.extract_strided_slice %209 {offsets = [0, 96], sizes = [8, 32], strides = [1, 1]} : vector<8x128xf32> to vector<8x32xf32>
    %215 = arith.mulf %212, %177 : vector<8x32xf32>
    %216 = arith.mulf %211, %213 : vector<8x32xf32>
    %217 = arith.addf %215, %216 : vector<8x32xf32>
    %218 = math.tanh %217 : vector<8x32xf32>
    %219 = arith.mulf %214, %218 : vector<8x32xf32>
    %220 = tpu.concatenate %219, %200 in 1 : vector<8x32xf32>, vector<8x32xf32> -> vector<8x64xf32>
    %c0_60 = arith.constant 0 : index
    %c0_61 = arith.constant 0 : index
    %221 = vector.load %arg2[%c0_60, %c0_61] : memref<64x128xf32, #tpu.memory_space<vmem>>, vector<64x128xf32>
    %cst_62 = arith.constant dense<0.000000e+00> : vector<8x128xf32>
    %222 = tpu.matmul %220, %221, %cst_62 {dimension_numbers = #tpu.dot_dimension_numbers<[1], [0], [0], [1], [0, 0, 1, 1], [], []>} : vector<8x64xf32>, vector<64x128xf32>, vector<8x128xf32> -> vector<8x128xf32>
    %c0_63 = arith.constant 0 : index
    %c0_64 = arith.constant 0 : index
    %223 = vector.load %arg3[%c0_63, %c0_64] : memref<1x128xf32, #tpu.memory_space<vmem>>, vector<1x128xf32>
    %224 = vector.broadcast %223 : vector<1x128xf32> to vector<8x128xf32>
    %225 = arith.addf %222, %224 : vector<8x128xf32>
    %226 = arith.negf %225 : vector<8x128xf32>
    %227 = math.exp %226 : vector<8x128xf32>
    %cst_65 = arith.constant 1.000000e+00 : f32
    %228 = vector.broadcast %cst_65 : f32 to vector<8x128xf32>
    %229 = arith.addf %228, %227 : vector<8x128xf32>
    %230 = arith.divf %228, %229 : vector<8x128xf32>
    %231 = math.tanh %225 : vector<8x128xf32>
    %232 = vector.extract_strided_slice %230 {offsets = [0, 0], sizes = [8, 32], strides = [1, 1]} : vector<8x128xf32> to vector<8x32xf32>
    %233 = vector.extract_strided_slice %230 {offsets = [0, 32], sizes = [8, 32], strides = [1, 1]} : vector<8x128xf32> to vector<8x32xf32>
    %234 = vector.extract_strided_slice %231 {offsets = [0, 64], sizes = [8, 32], strides = [1, 1]} : vector<8x128xf32> to vector<8x32xf32>
    %235 = vector.extract_strided_slice %230 {offsets = [0, 96], sizes = [8, 32], strides = [1, 1]} : vector<8x128xf32> to vector<8x32xf32>
    %236 = arith.mulf %233, %198 : vector<8x32xf32>
    %237 = arith.mulf %232, %234 : vector<8x32xf32>
    %238 = arith.addf %236, %237 : vector<8x32xf32>
    %239 = math.tanh %238 : vector<8x32xf32>
    %240 = arith.mulf %235, %239 : vector<8x32xf32>
    %c48 = arith.constant 48 : index
    %c0_66 = arith.constant 0 : index
    %241 = vector.load %arg0[%c48, %c0_66] : memref<64x128xf32, #tpu.memory_space<vmem>>, vector<8x128xf32>
    %c0_67 = arith.constant 0 : index
    %c0_68 = arith.constant 0 : index
    %242 = vector.load %arg1[%c0_67, %c0_68] : memref<32x128xf32, #tpu.memory_space<vmem>>, vector<32x128xf32>
    %cst_69 = arith.constant dense<0.000000e+00> : vector<8x128xf32>
    %243 = tpu.matmul %219, %242, %cst_69 {dimension_numbers = #tpu.dot_dimension_numbers<[1], [0], [0], [1], [0, 0, 1, 1], [], []>} : vector<8x32xf32>, vector<32x128xf32>, vector<8x128xf32> -> vector<8x128xf32>
    %244 = arith.addf %241, %243 : vector<8x128xf32>
    %245 = arith.negf %244 : vector<8x128xf32>
    %246 = math.exp %245 : vector<8x128xf32>
    %cst_70 = arith.constant 1.000000e+00 : f32
    %247 = vector.broadcast %cst_70 : f32 to vector<8x128xf32>
    %248 = arith.addf %247, %246 : vector<8x128xf32>
    %249 = arith.divf %247, %248 : vector<8x128xf32>
    %250 = math.tanh %244 : vector<8x128xf32>
    %251 = vector.extract_strided_slice %249 {offsets = [0, 0], sizes = [8, 32], strides = [1, 1]} : vector<8x128xf32> to vector<8x32xf32>
    %252 = vector.extract_strided_slice %249 {offsets = [0, 32], sizes = [8, 32], strides = [1, 1]} : vector<8x128xf32> to vector<8x32xf32>
    %253 = vector.extract_strided_slice %250 {offsets = [0, 64], sizes = [8, 32], strides = [1, 1]} : vector<8x128xf32> to vector<8x32xf32>
    %254 = vector.extract_strided_slice %249 {offsets = [0, 96], sizes = [8, 32], strides = [1, 1]} : vector<8x128xf32> to vector<8x32xf32>
    %255 = arith.mulf %252, %217 : vector<8x32xf32>
    %256 = arith.mulf %251, %253 : vector<8x32xf32>
    %257 = arith.addf %255, %256 : vector<8x32xf32>
    %258 = math.tanh %257 : vector<8x32xf32>
    %259 = arith.mulf %254, %258 : vector<8x32xf32>
    %260 = tpu.concatenate %259, %240 in 1 : vector<8x32xf32>, vector<8x32xf32> -> vector<8x64xf32>
    %c0_71 = arith.constant 0 : index
    %c0_72 = arith.constant 0 : index
    %261 = vector.load %arg2[%c0_71, %c0_72] : memref<64x128xf32, #tpu.memory_space<vmem>>, vector<64x128xf32>
    %cst_73 = arith.constant dense<0.000000e+00> : vector<8x128xf32>
    %262 = tpu.matmul %260, %261, %cst_73 {dimension_numbers = #tpu.dot_dimension_numbers<[1], [0], [0], [1], [0, 0, 1, 1], [], []>} : vector<8x64xf32>, vector<64x128xf32>, vector<8x128xf32> -> vector<8x128xf32>
    %c0_74 = arith.constant 0 : index
    %c0_75 = arith.constant 0 : index
    %263 = vector.load %arg3[%c0_74, %c0_75] : memref<1x128xf32, #tpu.memory_space<vmem>>, vector<1x128xf32>
    %264 = vector.broadcast %263 : vector<1x128xf32> to vector<8x128xf32>
    %265 = arith.addf %262, %264 : vector<8x128xf32>
    %266 = arith.negf %265 : vector<8x128xf32>
    %267 = math.exp %266 : vector<8x128xf32>
    %cst_76 = arith.constant 1.000000e+00 : f32
    %268 = vector.broadcast %cst_76 : f32 to vector<8x128xf32>
    %269 = arith.addf %268, %267 : vector<8x128xf32>
    %270 = arith.divf %268, %269 : vector<8x128xf32>
    %271 = math.tanh %265 : vector<8x128xf32>
    %272 = vector.extract_strided_slice %270 {offsets = [0, 0], sizes = [8, 32], strides = [1, 1]} : vector<8x128xf32> to vector<8x32xf32>
    %273 = vector.extract_strided_slice %270 {offsets = [0, 32], sizes = [8, 32], strides = [1, 1]} : vector<8x128xf32> to vector<8x32xf32>
    %274 = vector.extract_strided_slice %271 {offsets = [0, 64], sizes = [8, 32], strides = [1, 1]} : vector<8x128xf32> to vector<8x32xf32>
    %275 = vector.extract_strided_slice %270 {offsets = [0, 96], sizes = [8, 32], strides = [1, 1]} : vector<8x128xf32> to vector<8x32xf32>
    %276 = arith.mulf %273, %238 : vector<8x32xf32>
    %277 = arith.mulf %272, %274 : vector<8x32xf32>
    %278 = arith.addf %276, %277 : vector<8x32xf32>
    %279 = math.tanh %278 : vector<8x32xf32>
    %280 = arith.mulf %275, %279 : vector<8x32xf32>
    %c56 = arith.constant 56 : index
    %c0_77 = arith.constant 0 : index
    %281 = vector.load %arg0[%c56, %c0_77] : memref<64x128xf32, #tpu.memory_space<vmem>>, vector<8x128xf32>
    %c0_78 = arith.constant 0 : index
    %c0_79 = arith.constant 0 : index
    %282 = vector.load %arg1[%c0_78, %c0_79] : memref<32x128xf32, #tpu.memory_space<vmem>>, vector<32x128xf32>
    %cst_80 = arith.constant dense<0.000000e+00> : vector<8x128xf32>
    %283 = tpu.matmul %259, %282, %cst_80 {dimension_numbers = #tpu.dot_dimension_numbers<[1], [0], [0], [1], [0, 0, 1, 1], [], []>} : vector<8x32xf32>, vector<32x128xf32>, vector<8x128xf32> -> vector<8x128xf32>
    %284 = arith.addf %281, %283 : vector<8x128xf32>
    %285 = arith.negf %284 : vector<8x128xf32>
    %286 = math.exp %285 : vector<8x128xf32>
    %cst_81 = arith.constant 1.000000e+00 : f32
    %287 = vector.broadcast %cst_81 : f32 to vector<8x128xf32>
    %288 = arith.addf %287, %286 : vector<8x128xf32>
    %289 = arith.divf %287, %288 : vector<8x128xf32>
    %290 = math.tanh %284 : vector<8x128xf32>
    %291 = vector.extract_strided_slice %289 {offsets = [0, 0], sizes = [8, 32], strides = [1, 1]} : vector<8x128xf32> to vector<8x32xf32>
    %292 = vector.extract_strided_slice %289 {offsets = [0, 32], sizes = [8, 32], strides = [1, 1]} : vector<8x128xf32> to vector<8x32xf32>
    %293 = vector.extract_strided_slice %290 {offsets = [0, 64], sizes = [8, 32], strides = [1, 1]} : vector<8x128xf32> to vector<8x32xf32>
    %294 = vector.extract_strided_slice %289 {offsets = [0, 96], sizes = [8, 32], strides = [1, 1]} : vector<8x128xf32> to vector<8x32xf32>
    %295 = arith.mulf %292, %257 : vector<8x32xf32>
    %296 = arith.mulf %291, %293 : vector<8x32xf32>
    %297 = arith.addf %295, %296 : vector<8x32xf32>
    %298 = math.tanh %297 : vector<8x32xf32>
    %299 = arith.mulf %294, %298 : vector<8x32xf32>
    %300 = tpu.concatenate %299, %280 in 1 : vector<8x32xf32>, vector<8x32xf32> -> vector<8x64xf32>
    %c0_82 = arith.constant 0 : index
    %c0_83 = arith.constant 0 : index
    %301 = vector.load %arg2[%c0_82, %c0_83] : memref<64x128xf32, #tpu.memory_space<vmem>>, vector<64x128xf32>
    %cst_84 = arith.constant dense<0.000000e+00> : vector<8x128xf32>
    %302 = tpu.matmul %300, %301, %cst_84 {dimension_numbers = #tpu.dot_dimension_numbers<[1], [0], [0], [1], [0, 0, 1, 1], [], []>} : vector<8x64xf32>, vector<64x128xf32>, vector<8x128xf32> -> vector<8x128xf32>
    %c0_85 = arith.constant 0 : index
    %c0_86 = arith.constant 0 : index
    %303 = vector.load %arg3[%c0_85, %c0_86] : memref<1x128xf32, #tpu.memory_space<vmem>>, vector<1x128xf32>
    %304 = vector.broadcast %303 : vector<1x128xf32> to vector<8x128xf32>
    %305 = arith.addf %302, %304 : vector<8x128xf32>
    %306 = arith.negf %305 : vector<8x128xf32>
    %307 = math.exp %306 : vector<8x128xf32>
    %cst_87 = arith.constant 1.000000e+00 : f32
    %308 = vector.broadcast %cst_87 : f32 to vector<8x128xf32>
    %309 = arith.addf %308, %307 : vector<8x128xf32>
    %310 = arith.divf %308, %309 : vector<8x128xf32>
    %311 = math.tanh %305 : vector<8x128xf32>
    %312 = vector.extract_strided_slice %310 {offsets = [0, 0], sizes = [8, 32], strides = [1, 1]} : vector<8x128xf32> to vector<8x32xf32>
    %313 = vector.extract_strided_slice %310 {offsets = [0, 32], sizes = [8, 32], strides = [1, 1]} : vector<8x128xf32> to vector<8x32xf32>
    %314 = vector.extract_strided_slice %311 {offsets = [0, 64], sizes = [8, 32], strides = [1, 1]} : vector<8x128xf32> to vector<8x32xf32>
    %315 = vector.extract_strided_slice %310 {offsets = [0, 96], sizes = [8, 32], strides = [1, 1]} : vector<8x128xf32> to vector<8x32xf32>
    %316 = arith.mulf %313, %278 : vector<8x32xf32>
    %317 = arith.mulf %312, %314 : vector<8x32xf32>
    %318 = arith.addf %316, %317 : vector<8x32xf32>
    %319 = math.tanh %318 : vector<8x32xf32>
    %320 = arith.mulf %315, %319 : vector<8x32xf32>
    %c0_88 = arith.constant 0 : index
    %c0_89 = arith.constant 0 : index
    %321 = vector.load %arg4[%c0_88, %c0_89] : memref<32x128xf32, #tpu.memory_space<vmem>>, vector<32x128xf32>
    %cst_90 = arith.constant dense<0.000000e+00> : vector<8x128xf32>
    %322 = tpu.matmul %320, %321, %cst_90 {dimension_numbers = #tpu.dot_dimension_numbers<[1], [0], [0], [1], [0, 0, 1, 1], [], []>} : vector<8x32xf32>, vector<32x128xf32>, vector<8x128xf32> -> vector<8x128xf32>
    %c0_91 = arith.constant 0 : index
    %c0_92 = arith.constant 0 : index
    %323 = vector.load %arg5[%c0_91, %c0_92] : memref<1x128xf32, #tpu.memory_space<vmem>>, vector<1x128xf32>
    %324 = vector.broadcast %323 : vector<1x128xf32> to vector<8x128xf32>
    %325 = arith.addf %322, %324 : vector<8x128xf32>
    %c0_93 = arith.constant 0 : index
    %c0_94 = arith.constant 0 : index
    %326 = vector.load %arg6[%c0_93, %c0_94] : memref<8x128xf32, #tpu.memory_space<vmem>>, vector<8x128xf32>
    tpu.vector_store %arg6[%c0_93, %c0_94], %325 {strides = array<i32>} : memref<8x128xf32, #tpu.memory_space<vmem>>, vector<8x128xf32>,
    return
  }
}

</mosaic_0001>

<bundles_post_ra>
// kernel: rnn_shakespeare_forward.1
= control target key start
LH: loop header
LB: loop body
LE: loop exit
PB: predicated region body
PF: predicated region fallthrough
CT: control target
= control target key end

     0   :  { %v1282_v4 = vmov 0.0   ;;  %s1283_s30 = smov 64   ;;  %s1284_s7 = smov 32   ;;  %vm28_vm4 = vcmask 261120   ;;  %vm107_vm5 = vcmask 523264   ;;  %s1676_s1 = inlined_call_operand.vmem [shape: f32[32,128], index: 1, kind: input, shape index: {}]   ;;  %s1677_s0 = inlined_call_operand.vmem [shape: f32[64,128], index: 0, kind: input, shape index: {}]   ;;  %s1678_s2 = inlined_call_operand.vmem [shape: f32[64,128], index: 2, kind: input, shape index: {}]   ;;  %s1679_s3 = inlined_call_operand.vmem [shape: f32[1,128], index: 3, kind: input, shape index: {}]   ;;  %s1680_s4 = inlined_call_operand.vmem [shape: f32[32,128], index: 4, kind: input, shape index: {}]   ;;  %s1681_s5 = inlined_call_operand.vmem [shape: f32[1,128], index: 5, kind: input, shape index: {}]   ;;  %s1682_s6 = inlined_call_operand.vmem [shape: f32[8,128], index: 6, kind: output, shape index: {}]  }
   0x1   :  { %v1323_v0 = vld [vmem:[%s1676_s1 + $0x18] sm:$0xff]  ;;  %v1328_v1 = vld [vmem:[%s1676_s1 + $0x10] sm:$0xff]  ;;  %v1335_v2 = vld [vmem:[%s1676_s1 + $0x8] sm:$0xff] }
   0x2   :  { %44 = vmatpush.msra.mxu0 %v1323_v0  ;;  %183 = vmatpush.msra.mxu2 %v1323_v0  ;;  %v1342_v3 = vld [vmem:[%s1676_s1] sm:$0xff]  ;;  %v1368_v28 = vld [vmem:[%s1678_s2 + $0x38] sm:$0xff]  ;;  %v1373_v29 = vld [vmem:[%s1678_s2 + $0x30] sm:$0xff] }
   0x3   :  { %v23_v5 = vld [vmem:[%s1677_s0] sm:$0xff]  ;;  %119 = vmatpush.msra.mxu1 %v1368_v28  ;;  %249 = vmatpush.msra.mxu3 %v1368_v28  ;;  %v1380_v30 = vld [vmem:[%s1678_s2 + $0x28] sm:$0xff]  ;;  %v1396_v32 = vld [vmem:[%s1678_s2 + $0x18] sm:$0xff] }
   0x4   :  { %45 = vmatpush.msra.mxu0 %v1328_v1  ;;  %184 = vmatpush.msra.mxu2 %v1328_v1  ;;  %v1388_v31 = vld [vmem:[%s1678_s2 + $0x20] sm:$0xff]  ;;  %v1404_v33 = vld [vmem:[%s1678_s2 + $0x10] sm:$0xff]  ;;  %v1412_v34 = vld [vmem:[%s1678_s2 + $0x8] sm:$0xff] }
   0x5   :  { %120 = vmatpush.msra.mxu1 %v1373_v29  ;;  %250 = vmatpush.msra.mxu3 %v1373_v29  ;;  %v1425_v37 = vld [vmem:[%s1678_s2] sm:$0xff]  ;;  %v168_v43 = vld [vmem:[%s1677_s0 + $0x8] sm:$0xff] }
   0x6   :  { %46 = vmatpush.msra.mxu0 %v1335_v2  ;;  %185 = vmatpush.msra.mxu2 %v1335_v2  ;;  %v1456_v40 = vld [vmem:[%s1679_s3] ss:$0 sm:$0xff] }
   0x7   :  { %121 = vmatpush.msra.mxu1 %v1380_v30  ;;  %251 = vmatpush.msra.mxu3 %v1380_v30 }
   0x8   :  { %47 = vmatpush.msra.mxu0 %v1342_v3  ;;  %186 = vmatpush.msra.mxu2 %v1342_v3 }
   0x9   :  { %48 = vmatmul.f32.vlgmr.msra.gmra.mxu0 %v1282_v4  ;;  %122 = vmatpush.msra.mxu1 %v1388_v31 }
   0xa   :  { %313 = vmatpush.msrb.mxu0 %v1323_v0  ;;  %379 = vmatpush.msrb.mxu2 %v1368_v28 }
   0xb   :  { %252 = vmatpush.msra.mxu3 %v1388_v31  ;;  %123 = vmatpush.msra.mxu1 %v1396_v32 }
   0xc   :  { %314 = vmatpush.msrb.mxu0 %v1328_v1  ;;  %380 = vmatpush.msrb.mxu2 %v1373_v29 }
   0xd   :  { %253 = vmatpush.msra.mxu3 %v1396_v32  ;;  %124 = vmatpush.msra.mxu1 %v1404_v33 }
   0xe   :  { %315 = vmatpush.msrb.mxu0 %v1335_v2  ;;  %381 = vmatpush.msrb.mxu2 %v1380_v30 }
   0xf   :  { %254 = vmatpush.msra.mxu3 %v1404_v33  ;;  %125 = vmatpush.msra.mxu1 %v1412_v34 }
  0x10   :  { %316 = vmatpush.msrb.mxu0 %v1342_v3  ;;  %382 = vmatpush.msrb.mxu2 %v1388_v31 }
  0x11   :  { %255 = vmatpush.msra.mxu3 %v1412_v34  ;;  %126 = vmatpush.msra.mxu1 %v1425_v37 }
  0x12   :  { %443 = vmatpush.msra.mxu0 %v1323_v0  ;;  %383 = vmatpush.msrb.mxu2 %v1396_v32 }
  0x13   :  { %256 = vmatpush.msra.mxu3 %v1425_v37  ;;  %509 = vmatpush.msrb.mxu1 %v1368_v28 }
  0x14   :  { %444 = vmatpush.msra.mxu0 %v1328_v1  ;;  %384 = vmatpush.msrb.mxu2 %v1404_v33 }
  0x15   :  { %573 = vmatpush.msrb.mxu3 %v1323_v0  ;;  %510 = vmatpush.msrb.mxu1 %v1373_v29 }
  0x16   :  { %445 = vmatpush.msra.mxu0 %v1335_v2  ;;  %385 = vmatpush.msrb.mxu2 %v1412_v34 }
  0x17   :  { %574 = vmatpush.msrb.mxu3 %v1328_v1  ;;  %511 = vmatpush.msrb.mxu1 %v1380_v30 }
  0x18   :  { %446 = vmatpush.msra.mxu0 %v1342_v3  ;;  %386 = vmatpush.msrb.mxu2 %v1425_v37 }
  0x19   :  { %575 = vmatpush.msrb.mxu3 %v1335_v2  ;;  %512 = vmatpush.msrb.mxu1 %v1388_v31 }
  0x1b   :  { %576 = vmatpush.msrb.mxu3 %v1342_v3  ;;  %513 = vmatpush.msrb.mxu1 %v1396_v32 }
  0x1d   :  { %514 = vmatpush.msrb.mxu1 %v1404_v33 }
  0x1f   :  { %515 = vmatpush.msrb.mxu1 %v1412_v34 }
  0x21   :  { %516 = vmatpush.msrb.mxu1 %v1425_v37 }
  0x86   :  { %v49_v6 = vpop.f32.mrf.mxu0 }
  0x87   :  { %v52_v7 = vadd.f32 %v49_v6, %v23_v5 }
  0x89   :  { %1153 = vtanh.f32 %v52_v7  ;;  %v1116_v9 = vmul.f32 -1.442695, %v52_v7 }
  0x8b   :  { %1155 = vpow2.f32 %v1116_v9 }
  0x8f   :  { %v1154_v8 = vpop.eup %1153 }
  0x90   :  { %75 = vrot.lane.b32.xlu0 %v1154_v8, %s1283_s30 }
  0x91   :  { %v1156_v10 = vpop.eup %1155 }
  0x92   :  { %v56_v11 = vadd.f32 1.0, %v1156_v10 }
  0x94   :  { %1157 = vrcp.f32 %v56_v11  ;;  %v68_v17 = vand.u32 2147483648, %v56_v11  ;;  %vm62_vm1 = vweird.f32 %v56_v11  ;;  %v66_v18 = vand.u32 2147483647, %v56_v11 }
  0x96   :  { %v69_v20 = vor.u32 1.1754944e-38, %v68_v17  ;;  %vm67_vm3 = vcmp.eq.f32.partialorder %v66_v18, 8.507059e+37 }
  0x9a   :  { %v1158_v12 = vpop.eup %1157 }
  0x9b   :  { %v58_v13 = vmul.f32 %v1158_v12, %v56_v11  ;;  %vm63_vm0 = vweird.f32 %v1158_v12 }
  0x9c   :  { %vm64_vm2 = vmor %vm62_vm1, %vm63_vm0 }
  0x9d   :  { %v59_v14 = vsub.f32 1.0, %v58_v13 }
  0x9f   :  { %v60_v15 = vmul.f32 %v1158_v12, %v59_v14 }
  0xa1   :  { %v61_v16 = vadd.f32 %v1158_v12, %v60_v15 }
  0xa3   :  { %v65_v19 = vsel %vm64_vm2, %v1158_v12, %v61_v16 }
  0xa4   :  { %v70_v22 = vsel %vm67_vm3, %v69_v20, %v65_v19 }
  0xa5   :  { %v73_v24 = vmul.f32 0.0, %v70_v22 }
 0x102   :  { %v76_v21 = vpop.permute.xlu0 %75 }
 0x103   :  { %v78_v23 = vmul.f32 %v76_v21, %v70_v22 }
 0x105   :  { %80 = vrot.lane.b32.xlu0 %v78_v23, %s1284_s7 }
 0x177   :  { %v81_v25 = vpop.permute.xlu0 %80 }
 0x178   :  { %v1361_v26 = vadd.f32 %v81_v25, %v73_v24 }
 0x17a   :  { %1159 = vtanh.f32 %v1361_v26 }
 0x180   :  { %v1160_v27 = vpop.eup %1159 }
 0x181   :  { %86 = vrot.lane.b32.xlu1 %v1160_v27, %s1283_s30 }
 0x1f3   :  { %v87_v35 = vpop.permute.xlu1 %86 }
 0x1f4   :  { %v89_v36 = vmul.f32 %v87_v35, %v70_v22 }
 0x1f6   :  { %91 = vrot.lane.b32.xlu1 %v89_v36, %s1284_s7 }
 0x268   :  { %v92_v38 = vpop.permute.xlu1 %91 }
 0x269   :  { %1119 = vmatmul.msk.f32.vlgmr.msra.gmra.mxu2 %vm28_vm4, %v92_v38  ;;  %v94_v39 = vsel %vm28_vm4, %v92_v38, 0.0 }
 0x26a   :  { %1117 = vmatmul.msk.f32.vlgmr.msra.gmra.mxu1 %vm107_vm5, %v94_v39  ;;  %703 = vmatpush.msra.mxu2 %v1323_v0 }
 0x26b   :  { %833 = vmatpush.msra.mxu1 %v1323_v0 }
 0x26c   :  { %704 = vmatpush.msra.mxu2 %v1328_v1 }
 0x26d   :  { %834 = vmatpush.msra.mxu1 %v1328_v1 }
 0x26e   :  { %705 = vmatpush.msra.mxu2 %v1335_v2 }
 0x26f   :  { %835 = vmatpush.msra.mxu1 %v1335_v2 }
 0x270   :  { %706 = vmatpush.msra.mxu2 %v1342_v3 }
 0x271   :  { %836 = vmatpush.msra.mxu1 %v1342_v3 }
 0x2e7   :  { %v128_v41 = vpop.f32.mrf.mxu1 }
 0x2e8   :  { %v129_v42 = vadd.f32 %v1456_v40, %v128_v41 }
 0x2ea   :  { %1161 = vtanh.f32 %v129_v42  ;;  %v1118_v48 = vmul.f32 -1.442695, %v129_v42  ;;  %v298_v42 = vld [vmem:[%s1677_s0 + $0x10] sm:$0xff] }
 0x2ec   :  { %v188_v44 = vpop.f32.mrf.mxu2 }
 0x2ed   :  { %v191_v45 = vadd.f32 %v188_v44, %v168_v43 }
 0x2ef   :  { %1163 = vtanh.f32 %v191_v45  ;;  %v1120_v49 = vmul.f32 -1.442695, %v191_v45 }
 0x2f0   :  { %v1162_v46 = vpop.eup %1161  ;;  %1165 = vpow2.f32 %v1118_v48 }
 0x2f1   :  { %153 = vrot.lane.b32.xlu2 %v1162_v46, %s1283_s30  ;;  %1167 = vpow2.f32 %v1120_v49 }
 0x2f5   :  { %v1164_v47 = vpop.eup %1163 }
 0x2f6   :  { %v1166_v50 = vpop.eup %1165 }
 0x2f7   :  { %v134_v51 = vadd.f32 1.0, %v1166_v50  ;;  %v1168_v52 = vpop.eup %1167 }
 0x2f8   :  { %v195_v53 = vadd.f32 1.0, %v1168_v52 }
 0x2f9   :  { %214 = vrot.lane.b32.xlu2 %v1164_v47, %s1283_s30  ;;  %1169 = vrcp.f32 %v134_v51  ;;  %v146_v62 = vand.u32 2147483648, %v134_v51  ;;  %vm140_vm7 = vweird.f32 %v134_v51  ;;  %v144_v63 = vand.u32 2147483647, %v134_v51 }
 0x2fa   :  { %1171 = vrcp.f32 %v195_v53  ;;  %v207_v11 = vand.u32 2147483648, %v195_v53  ;;  %vm201_vm11 = vweird.f32 %v195_v53  ;;  %v205_v12 = vand.u32 2147483647, %v195_v53 }
 0x2fb   :  { %v147_v6 = vor.u32 1.1754944e-38, %v146_v62  ;;  %vm145_vm9 = vcmp.eq.f32.partialorder %v144_v63, 8.507059e+37 }
 0x2fc   :  { %v208_v14 = vor.u32 1.1754944e-38, %v207_v11  ;;  %vm206_vm13 = vcmp.eq.f32.partialorder %v205_v12, 8.507059e+37 }
 0x2ff   :  { %v1170_v54 = vpop.eup %1169 }
 0x300   :  { %v136_v55 = vmul.f32 %v1170_v54, %v134_v51  ;;  %v1172_v57 = vpop.eup %1171  ;;  %vm141_vm6 = vweird.f32 %v1170_v54 }
 0x301   :  { %v197_v59 = vmul.f32 %v1172_v57, %v195_v53  ;;  %vm142_vm8 = vmor %vm140_vm7, %vm141_vm6  ;;  %vm202_vm10 = vweird.f32 %v1172_v57 }
 0x302   :  { %v137_v56 = vsub.f32 1.0, %v136_v55  ;;  %vm203_vm12 = vmor %vm201_vm11, %vm202_vm10 }
 0x303   :  { %v198_v61 = vsub.f32 1.0, %v197_v59 }
 0x304   :  { %v138_v58 = vmul.f32 %v1170_v54, %v137_v56 }
 0x305   :  { %v199_v5 = vmul.f32 %v1172_v57, %v198_v61 }
 0x306   :  { %v139_v60 = vadd.f32 %v1170_v54, %v138_v58 }
 0x307   :  { %v200_v10 = vadd.f32 %v1172_v57, %v199_v5 }
 0x308   :  { %v143_v4 = vsel %vm142_vm8, %v1170_v54, %v139_v60 }
 0x309   :  { %v148_v8 = vsel %vm145_vm9, %v147_v6, %v143_v4  ;;  %v204_v13 = vsel %vm203_vm12, %v1172_v57, %v200_v10 }
 0x30a   :  { %v209_v15 = vsel %vm206_vm13, %v208_v14, %v204_v13  ;;  %v151_v18 = vmul.f32 0.0, %v148_v8 }
 0x30b   :  { %v212_v21 = vmul.f32 %v209_v15, %v1361_v26 }
 0x34b   :  { %v154_v7 = vpop.permute.xlu2 %153 }
 0x34c   :  { %v156_v9 = vmul.f32 %v154_v7, %v148_v8 }
 0x34e   :  { %158 = vrot.lane.b32.xlu0 %v156_v9, %s1284_s7 }
 0x353   :  { %v215_v16 = vpop.permute.xlu2 %214 }
 0x354   :  { %v217_v17 = vmul.f32 %v215_v16, %v209_v15 }
 0x356   :  { %219 = vrot.lane.b32.xlu1 %v217_v17, %s1284_s7 }
 0x3c0   :  { %v159_v19 = vpop.permute.xlu0 %158 }
 0x3c1   :  { %v1466_v20 = vadd.f32 %v159_v19, %v151_v18 }
 0x3c3   :  { %1173 = vtanh.f32 %v1466_v20 }
 0x3c8   :  { %v220_v22 = vpop.permute.xlu1 %219 }
 0x3c9   :  { %v1174_v23 = vpop.eup %1173  ;;  %v1470_v24 = vadd.f32 %v220_v22, %v212_v21 }
 0x3ca   :  { %164 = vrot.lane.b32.xlu2 %v1174_v23, %s1283_s30 }
 0x3cb   :  { %1175 = vtanh.f32 %v1470_v24 }
 0x3d1   :  { %v1176_v25 = vpop.eup %1175 }
 0x3d2   :  { %225 = vrot.lane.b32.xlu0 %v1176_v25, %s1283_s30 }
 0x424   :  { %v165_v27 = vpop.permute.xlu2 %164 }
 0x425   :  { %v167_v35 = vmul.f32 %v165_v27, %v148_v8 }
 0x427   :  { %234 = vrot.lane.b32.xlu2 %v167_v35, %s1283_s30 }
 0x444   :  { %v226_v36 = vpop.permute.xlu0 %225 }
 0x445   :  { %v228_v38 = vmul.f32 %v226_v36, %v209_v15 }
 0x447   :  { %230 = vrot.lane.b32.xlu1 %v228_v38, %s1284_s7 }
 0x481   :  { %v235_v26 = vpop.permute.xlu2 %234 }
 0x4b9   :  { %v231_v39 = vpop.permute.xlu1 %230 }
 0x4ba   :  { %1123 = vmatmul.msk.f32.vlgmr.msrb.gmra.mxu0 %vm28_vm4, %v231_v39  ;;  %v237_v41 = vsel %vm28_vm4, %v231_v39, %v235_v26 }
 0x4bb   :  { %1121 = vmatmul.msk.f32.vlgmr.msra.gmra.mxu3 %vm107_vm5, %v237_v41  ;;  %639 = vmatpush.msrb.mxu0 %v1368_v28 }
 0x4bc   :  { %769 = vmatpush.msra.mxu3 %v1368_v28 }
 0x4bd   :  { %640 = vmatpush.msrb.mxu0 %v1373_v29 }
 0x4be   :  { %770 = vmatpush.msra.mxu3 %v1373_v29 }
 0x4bf   :  { %641 = vmatpush.msrb.mxu0 %v1380_v30 }
 0x4c0   :  { %771 = vmatpush.msra.mxu3 %v1380_v30 }
 0x4c1   :  { %642 = vmatpush.msrb.mxu0 %v1388_v31 }
 0x4c2   :  { %772 = vmatpush.msra.mxu3 %v1388_v31 }
 0x4c3   :  { %643 = vmatpush.msrb.mxu0 %v1396_v32 }
 0x4c4   :  { %773 = vmatpush.msra.mxu3 %v1396_v32 }
 0x4c5   :  { %644 = vmatpush.msrb.mxu0 %v1404_v33 }
 0x4c6   :  { %774 = vmatpush.msra.mxu3 %v1404_v33 }
 0x4c7   :  { %645 = vmatpush.msrb.mxu0 %v1412_v34 }
 0x4c8   :  { %775 = vmatpush.msra.mxu3 %v1412_v34 }
 0x4c9   :  { %646 = vmatpush.msrb.mxu0 %v1425_v37 }
 0x4ca   :  { %776 = vmatpush.msra.mxu3 %v1425_v37 }
 0x537   :  { %v318_v43 = vpop.f32.mrf.mxu0 }
 0x538   :  { %v321_v44 = vadd.f32 %v318_v43, %v298_v42 }
 0x53a   :  { %1177 = vtanh.f32 %v321_v44  ;;  %v1124_v49 = vmul.f32 -1.442695, %v321_v44 }
 0x53e   :  { %v258_v45 = vpop.f32.mrf.mxu3 }
 0x53f   :  { %v259_v46 = vadd.f32 %v1456_v40, %v258_v45 }
 0x540   :  { %v1178_v47 = vpop.eup %1177 }
 0x541   :  { %1179 = vtanh.f32 %v259_v46  ;;  %344 = vrot.lane.b32.xlu0 %v1178_v47, %s1283_s30  ;;  %v1122_v50 = vmul.f32 -1.442695, %v259_v46 }
 0x542   :  { %1181 = vpow2.f32 %v1124_v49 }
 0x543   :  { %1183 = vpow2.f32 %v1122_v50 }
 0x547   :  { %v1180_v48 = vpop.eup %1179 }
 0x548   :  { %283 = vrot.lane.b32.xlu1 %v1180_v48, %s1283_s30  ;;  %v1182_v51 = vpop.eup %1181 }
 0x549   :  { %v325_v52 = vadd.f32 1.0, %v1182_v51  ;;  %v1184_v53 = vpop.eup %1183 }
 0x54a   :  { %v264_v54 = vadd.f32 1.0, %v1184_v53 }
 0x54b   :  { %1185 = vrcp.f32 %v325_v52  ;;  %v337_v63 = vand.u32 2147483648, %v325_v52  ;;  %vm331_vm15 = vweird.f32 %v325_v52  ;;  %v335_v4 = vand.u32 2147483647, %v325_v52 }
 0x54c   :  { %1187 = vrcp.f32 %v264_v54  ;;  %v276_v12 = vand.u32 2147483648, %v264_v54  ;;  %vm270_vm3 = vweird.f32 %v264_v54  ;;  %v274_v13 = vand.u32 2147483647, %v264_v54 }
 0x54d   :  { %v338_v7 = vor.u32 1.1754944e-38, %v337_v63  ;;  %vm336_vm1 = vcmp.eq.f32.partialorder %v335_v4, 8.507059e+37 }
 0x54e   :  { %v277_v15 = vor.u32 1.1754944e-38, %v276_v12  ;;  %vm275_vm7 = vcmp.eq.f32.partialorder %v274_v13, 8.507059e+37 }
 0x551   :  { %v1186_v55 = vpop.eup %1185 }
 0x552   :  { %v327_v56 = vmul.f32 %v1186_v55, %v325_v52  ;;  %v1188_v57 = vpop.eup %1187  ;;  %vm332_vm14 = vweird.f32 %v1186_v55 }
 0x553   :  { %v266_v59 = vmul.f32 %v1188_v57, %v264_v54  ;;  %vm333_vm0 = vmor %vm331_vm15, %vm332_vm14  ;;  %vm271_vm2 = vweird.f32 %v1188_v57 }
 0x554   :  { %v328_v58 = vsub.f32 1.0, %v327_v56  ;;  %vm272_vm6 = vmor %vm270_vm3, %vm271_vm2 }
 0x555   :  { %v267_v61 = vsub.f32 1.0, %v266_v59 }
 0x556   :  { %v329_v60 = vmul.f32 %v1186_v55, %v328_v58 }
 0x557   :  { %v268_v5 = vmul.f32 %v1188_v57, %v267_v61 }
 0x558   :  { %v330_v62 = vadd.f32 %v1186_v55, %v329_v60 }
 0x559   :  { %v269_v10 = vadd.f32 %v1188_v57, %v268_v5 }
 0x55a   :  { %v334_v6 = vsel %vm333_vm0, %v1186_v55, %v330_v62 }
 0x55b   :  { %v339_v9 = vsel %vm336_vm1, %v338_v7, %v334_v6  ;;  %v273_v14 = vsel %vm272_vm6, %v1188_v57, %v269_v10 }
 0x55c   :  { %v278_v17 = vsel %vm275_vm7, %v277_v15, %v273_v14  ;;  %v342_v19 = vmul.f32 %v339_v9, %v1470_v24 }
 0x55d   :  { %v281_v25 = vmul.f32 %v278_v17, %v1466_v20 }
 0x5b3   :  { %v345_v8 = vpop.permute.xlu0 %344 }
 0x5b4   :  { %v347_v11 = vmul.f32 %v345_v8, %v339_v9 }
 0x5b6   :  { %349 = vrot.lane.b32.xlu2 %v347_v11, %s1284_s7 }
 0x5ba   :  { %v284_v16 = vpop.permute.xlu1 %283 }
 0x5bb   :  { %v286_v18 = vmul.f32 %v284_v16, %v278_v17 }
 0x5bd   :  { %288 = vrot.lane.b32.xlu0 %v286_v18, %s1284_s7 }
 0x610   :  { %v350_v21 = vpop.permute.xlu2 %349 }
 0x611   :  { %v1505_v22 = vadd.f32 %v350_v21, %v342_v19 }
 0x613   :  { %1189 = vtanh.f32 %v1505_v22 }
 0x619   :  { %v1190_v23 = vpop.eup %1189 }
 0x61a   :  { %355 = vrot.lane.b32.xlu1 %v1190_v23, %s1283_s30 }
 0x62f   :  { %v289_v27 = vpop.permute.xlu0 %288 }
 0x630   :  { %v1510_v35 = vadd.f32 %v289_v27, %v281_v25 }
 0x632   :  { %1191 = vtanh.f32 %v1510_v35 }
 0x638   :  { %v1192_v36 = vpop.eup %1191 }
 0x639   :  { %294 = vrot.lane.b32.xlu2 %v1192_v36, %s1283_s30 }
 0x68c   :  { %v356_v38 = vpop.permute.xlu1 %355 }
 0x68d   :  { %v358_v24 = vmul.f32 %v356_v38, %v339_v9 }
 0x68f   :  { %360 = vrot.lane.b32.xlu0 %v358_v24, %s1284_s7 }
 0x693   :  { %v295_v26 = vpop.permute.xlu2 %294 }
 0x694   :  { %v297_v39 = vmul.f32 %v295_v26, %v278_v17 }
 0x696   :  { %364 = vrot.lane.b32.xlu1 %v297_v39, %s1283_s30 }
 0x701   :  { %v361_v41 = vpop.permute.xlu0 %360 }
 0x702   :  { %1127 = vmatmul.msk.f32.vlgmr.msra.gmra.mxu0 %vm28_vm4, %v361_v41 }
 0x703   :  { %963 = vmatpush.msra.mxu0 %v1323_v0  ;;  %v428_v0 = vld [vmem:[%s1677_s0 + $0x18] sm:$0xff] }
 0x705   :  { %964 = vmatpush.msra.mxu0 %v1328_v1 }
 0x707   :  { %965 = vmatpush.msra.mxu0 %v1335_v2 }
 0x708   :  { %v365_v20 = vpop.permute.xlu1 %364 }
 0x709   :  { %v367_v42 = vsel %vm28_vm4, %v361_v41, %v365_v20  ;;  %966 = vmatpush.msra.mxu0 %v1342_v3  ;;  %v558_v41 = vld [vmem:[%s1677_s0 + $0x20] sm:$0xff] }
 0x70a   :  { %1125 = vmatmul.msk.f32.vlgmr.msrb.gmra.mxu2 %vm107_vm5, %v367_v42 }
 0x70b   :  { %899 = vmatpush.msrb.mxu2 %v1368_v28 }
 0x70d   :  { %900 = vmatpush.msrb.mxu2 %v1373_v29 }
 0x70f   :  { %901 = vmatpush.msrb.mxu2 %v1380_v30 }
 0x711   :  { %902 = vmatpush.msrb.mxu2 %v1388_v31 }
 0x713   :  { %903 = vmatpush.msrb.mxu2 %v1396_v32 }
 0x715   :  { %904 = vmatpush.msrb.mxu2 %v1404_v33 }
 0x717   :  { %905 = vmatpush.msrb.mxu2 %v1412_v34 }
 0x719   :  { %906 = vmatpush.msrb.mxu2 %v1425_v37 }
 0x77f   :  { %v448_v1 = vpop.f32.mrf.mxu0 }
 0x780   :  { %v451_v2 = vadd.f32 %v448_v1, %v428_v0 }
 0x782   :  { %1193 = vtanh.f32 %v451_v2  ;;  %v1128_v46 = vmul.f32 -1.442695, %v451_v2 }
 0x788   :  { %v1194_v3 = vpop.eup %1193 }
 0x789   :  { %474 = vrot.lane.b32.xlu2 %v1194_v3, %s1283_s30 }
 0x78d   :  { %v388_v43 = vpop.f32.mrf.mxu2 }
 0x78e   :  { %v389_v44 = vadd.f32 %v1456_v40, %v388_v43 }
 0x790   :  { %1195 = vtanh.f32 %v389_v44  ;;  %v1126_v53 = vmul.f32 -1.442695, %v389_v44 }
 0x791   :  { %1197 = vpow2.f32 %v1128_v46 }
 0x796   :  { %v1196_v45 = vpop.eup %1195 }
 0x797   :  { %413 = vrot.lane.b32.xlu0 %v1196_v45, %s1283_s30  ;;  %v1198_v47 = vpop.eup %1197 }
 0x798   :  { %v455_v48 = vadd.f32 1.0, %v1198_v47 }
 0x79a   :  { %1199 = vrcp.f32 %v455_v48  ;;  %v467_v55 = vand.u32 2147483648, %v455_v48  ;;  %vm461_vm9 = vweird.f32 %v455_v48  ;;  %v465_v56 = vand.u32 2147483647, %v455_v48 }
 0x79b   :  { %1201 = vpow2.f32 %v1126_v53 }
 0x79c   :  { %v468_v58 = vor.u32 1.1754944e-38, %v467_v55  ;;  %vm466_vm11 = vcmp.eq.f32.partialorder %v465_v56, 8.507059e+37 }
 0x7a0   :  { %v1200_v49 = vpop.eup %1199 }
 0x7a1   :  { %v457_v50 = vmul.f32 %v1200_v49, %v455_v48  ;;  %vm462_vm8 = vweird.f32 %v1200_v49  ;;  %v1202_v62 = vpop.eup %1201 }
 0x7a2   :  { %vm463_vm10 = vmor %vm461_vm9, %vm462_vm8  ;;  %v394_v63 = vadd.f32 1.0, %v1202_v62 }
 0x7a3   :  { %v458_v51 = vsub.f32 1.0, %v457_v50 }
 0x7a4   :  { %1203 = vrcp.f32 %v394_v63  ;;  %v406_v9 = vand.u32 2147483648, %v394_v63  ;;  %vm400_vm13 = vweird.f32 %v394_v63  ;;  %v404_v10 = vand.u32 2147483647, %v394_v63 }
 0x7a5   :  { %v459_v52 = vmul.f32 %v1200_v49, %v458_v51 }
 0x7a6   :  { %v407_v12 = vor.u32 1.1754944e-38, %v406_v9  ;;  %vm405_vm15 = vcmp.eq.f32.partialorder %v404_v10, 8.507059e+37 }
 0x7a7   :  { %v460_v54 = vadd.f32 %v1200_v49, %v459_v52 }
 0x7a9   :  { %v464_v57 = vsel %vm463_vm10, %v1200_v49, %v460_v54 }
 0x7aa   :  { %v469_v59 = vsel %vm466_vm11, %v468_v58, %v464_v57  ;;  %v1204_v4 = vpop.eup %1203 }
 0x7ab   :  { %v396_v5 = vmul.f32 %v1204_v4, %v394_v63  ;;  %vm401_vm12 = vweird.f32 %v1204_v4  ;;  %v472_v16 = vmul.f32 %v469_v59, %v1505_v22 }
 0x7ac   :  { %vm402_vm14 = vmor %vm400_vm13, %vm401_vm12 }
 0x7ad   :  { %v397_v6 = vsub.f32 1.0, %v396_v5 }
 0x7af   :  { %v398_v7 = vmul.f32 %v1204_v4, %v397_v6 }
 0x7b1   :  { %v399_v8 = vadd.f32 %v1204_v4, %v398_v7 }
 0x7b3   :  { %v403_v11 = vsel %vm402_vm14, %v1204_v4, %v399_v8 }
 0x7b4   :  { %v408_v14 = vsel %vm405_vm15, %v407_v12, %v403_v11 }
 0x7b5   :  { %v411_v21 = vmul.f32 %v408_v14, %v1510_v35 }
 0x7e3   :  { %v475_v60 = vpop.permute.xlu2 %474 }
 0x7e4   :  { %v477_v61 = vmul.f32 %v475_v60, %v469_v59 }
 0x7e6   :  { %479 = vrot.lane.b32.xlu1 %v477_v61, %s1284_s7 }
 0x809   :  { %v414_v13 = vpop.permute.xlu0 %413 }
 0x80a   :  { %v416_v15 = vmul.f32 %v414_v13, %v408_v14 }
 0x80c   :  { %418 = vrot.lane.b32.xlu2 %v416_v15, %s1284_s7 }
 0x858   :  { %v480_v17 = vpop.permute.xlu1 %479 }
 0x859   :  { %v1540_v18 = vadd.f32 %v480_v17, %v472_v16 }
 0x85b   :  { %1205 = vtanh.f32 %v1540_v18 }
 0x861   :  { %v1206_v19 = vpop.eup %1205 }
 0x862   :  { %485 = vrot.lane.b32.xlu0 %v1206_v19, %s1283_s30 }
 0x866   :  { %v419_v23 = vpop.permute.xlu2 %418 }
 0x867   :  { %v1545_v25 = vadd.f32 %v419_v23, %v411_v21  ;;  %v688_v21 = vld [vmem:[%s1677_s0 + $0x28] sm:$0xff] }
 0x869   :  { %1207 = vtanh.f32 %v1545_v25 }
 0x86f   :  { %v1208_v27 = vpop.eup %1207 }
 0x870   :  { %424 = vrot.lane.b32.xlu1 %v1208_v27, %s1283_s30 }
 0x8d4   :  { %v486_v36 = vpop.permute.xlu0 %485 }
 0x8d5   :  { %v488_v22 = vmul.f32 %v486_v36, %v469_v59 }
 0x8d7   :  { %490 = vrot.lane.b32.xlu2 %v488_v22, %s1284_s7 }
 0x8e2   :  { %v425_v38 = vpop.permute.xlu1 %424 }
 0x8e3   :  { %v427_v24 = vmul.f32 %v425_v38, %v408_v14 }
 0x8e5   :  { %494 = vrot.lane.b32.xlu0 %v427_v24, %s1283_s30 }
 0x931   :  { %v491_v26 = vpop.permute.xlu2 %490 }
 0x932   :  { %1131 = vmatmul.msk.f32.vlgmr.msrb.gmra.mxu3 %vm28_vm4, %v491_v26 }
 0x957   :  { %v495_v35 = vpop.permute.xlu0 %494 }
 0x958   :  { %v497_v39 = vsel %vm28_vm4, %v491_v26, %v495_v35 }
 0x959   :  { %1129 = vmatmul.msk.f32.vlgmr.msrb.gmra.mxu1 %vm107_vm5, %v497_v39 }
 0x95a   :  { %1029 = vmatpush.msrb.mxu1 %v1368_v28 }
 0x95c   :  { %1030 = vmatpush.msrb.mxu1 %v1373_v29 }
 0x95e   :  { %1031 = vmatpush.msrb.mxu1 %v1380_v30 }
 0x960   :  { %1032 = vmatpush.msrb.mxu1 %v1388_v31 }
 0x962   :  { %1033 = vmatpush.msrb.mxu1 %v1396_v32 }
 0x964   :  { %1034 = vmatpush.msrb.mxu1 %v1404_v33 }
 0x966   :  { %1035 = vmatpush.msrb.mxu1 %v1412_v34 }
 0x968   :  { %1036 = vmatpush.msrb.mxu1 %v1425_v37 }
 0x9b5   :  { %v578_v20 = vpop.f32.mrf.mxu3 }
 0x9b6   :  { %v581_v28 = vadd.f32 %v578_v20, %v558_v41 }
 0x9b8   :  { %1209 = vtanh.f32 %v581_v28  ;;  %v1132_v33 = vmul.f32 -1.442695, %v581_v28 }
 0x9be   :  { %v1210_v29 = vpop.eup %1209 }
 0x9bf   :  { %604 = vrot.lane.b32.xlu1 %v1210_v29, %s1283_s30 }
 0x9d6   :  { %v518_v30 = vpop.f32.mrf.mxu1 }
 0x9d7   :  { %v519_v31 = vadd.f32 %v1456_v40, %v518_v30 }
 0x9d9   :  { %1211 = vtanh.f32 %v519_v31  ;;  %v1130_v34 = vmul.f32 -1.442695, %v519_v31 }
 0x9da   :  { %1213 = vpow2.f32 %v1132_v33 }
 0x9db   :  { %1215 = vpow2.f32 %v1130_v34 }
 0x9df   :  { %v1212_v32 = vpop.eup %1211 }
 0x9e0   :  { %543 = vrot.lane.b32.xlu2 %v1212_v32, %s1283_s30  ;;  %v1214_v37 = vpop.eup %1213 }
 0x9e1   :  { %v585_v42 = vadd.f32 1.0, %v1214_v37  ;;  %v1216_v0 = vpop.eup %1215 }
 0x9e2   :  { %v524_v1 = vadd.f32 1.0, %v1216_v0 }
 0x9e3   :  { %1217 = vrcp.f32 %v585_v42  ;;  %v597_v48 = vand.u32 2147483648, %v585_v42  ;;  %vm591_vm1 = vweird.f32 %v585_v42  ;;  %v595_v50 = vand.u32 2147483647, %v585_v42 }
 0x9e4   :  { %1219 = vrcp.f32 %v524_v1  ;;  %v536_v58 = vand.u32 2147483648, %v524_v1  ;;  %vm530_vm7 = vweird.f32 %v524_v1  ;;  %v534_v59 = vand.u32 2147483647, %v524_v1 }
 0x9e5   :  { %v598_v52 = vor.u32 1.1754944e-38, %v597_v48  ;;  %vm596_vm3 = vcmp.eq.f32.partialorder %v595_v50, 8.507059e+37 }
 0x9e6   :  { %v537_v61 = vor.u32 1.1754944e-38, %v536_v58  ;;  %vm535_vm9 = vcmp.eq.f32.partialorder %v534_v59, 8.507059e+37 }
 0x9e9   :  { %v1218_v2 = vpop.eup %1217 }
 0x9ea   :  { %v587_v3 = vmul.f32 %v1218_v2, %v585_v42  ;;  %v1220_v44 = vpop.eup %1219  ;;  %vm592_vm0 = vweird.f32 %v1218_v2 }
 0x9eb   :  { %v526_v46 = vmul.f32 %v1220_v44, %v524_v1  ;;  %vm593_vm2 = vmor %vm591_vm1, %vm592_vm0  ;;  %vm531_vm6 = vweird.f32 %v1220_v44 }
 0x9ec   :  { %v588_v43 = vsub.f32 1.0, %v587_v3  ;;  %vm532_vm8 = vmor %vm530_vm7, %vm531_vm6 }
 0x9ed   :  { %v527_v49 = vsub.f32 1.0, %v526_v46 }
 0x9ee   :  { %v589_v45 = vmul.f32 %v1218_v2, %v588_v43 }
 0x9ef   :  { %v528_v53 = vmul.f32 %v1220_v44, %v527_v49 }
 0x9f0   :  { %v590_v47 = vadd.f32 %v1218_v2, %v589_v45 }
 0x9f1   :  { %v529_v57 = vadd.f32 %v1220_v44, %v528_v53 }
 0x9f2   :  { %v594_v51 = vsel %vm593_vm2, %v1218_v2, %v590_v47 }
 0x9f3   :  { %v599_v55 = vsel %vm596_vm3, %v598_v52, %v594_v51  ;;  %v533_v60 = vsel %vm532_vm8, %v1220_v44, %v529_v57 }
 0x9f4   :  { %v538_v63 = vsel %vm535_vm9, %v537_v61, %v533_v60  ;;  %v602_v5 = vmul.f32 %v599_v55, %v1540_v18 }
 0x9f5   :  { %v541_v8 = vmul.f32 %v538_v63, %v1545_v25 }
 0xa31   :  { %v605_v54 = vpop.permute.xlu1 %604 }
 0xa32   :  { %v607_v56 = vmul.f32 %v605_v54, %v599_v55 }
 0xa34   :  { %609 = vrot.lane.b32.xlu0 %v607_v56, %s1284_s7 }
 0xa3a   :  { %v544_v62 = vpop.permute.xlu2 %543 }
 0xa3b   :  { %v546_v4 = vmul.f32 %v544_v62, %v538_v63 }
 0xa3d   :  { %548 = vrot.lane.b32.xlu1 %v546_v4, %s1284_s7 }
 0xaa6   :  { %v610_v6 = vpop.permute.xlu0 %609 }
 0xaa7   :  { %v1571_v7 = vadd.f32 %v610_v6, %v602_v5 }
 0xaa9   :  { %1221 = vtanh.f32 %v1571_v7 }
 0xaaf   :  { %v1222_v9 = vpop.eup %1221  ;;  %v549_v10 = vpop.permute.xlu1 %548 }
 0xab0   :  { %v1575_v11 = vadd.f32 %v549_v10, %v541_v8  ;;  %615 = vrot.lane.b32.xlu2 %v1222_v9, %s1283_s30  ;;  %v818_v9 = vld [vmem:[%s1677_s0 + $0x30] sm:$0xff] }
 0xab2   :  { %1223 = vtanh.f32 %v1575_v11 }
 0xab8   :  { %v1224_v12 = vpop.eup %1223 }
 0xab9   :  { %554 = vrot.lane.b32.xlu0 %v1224_v12, %s1283_s30 }
 0xb0a   :  { %v616_v13 = vpop.permute.xlu2 %615 }
 0xb0b   :  { %v618_v14 = vmul.f32 %v616_v13, %v599_v55 }
 0xb0d   :  { %620 = vrot.lane.b32.xlu1 %v618_v14, %s1284_s7 }
 0xb2b   :  { %v555_v15 = vpop.permute.xlu0 %554 }
 0xb2c   :  { %v557_v16 = vmul.f32 %v555_v15, %v538_v63 }
 0xb2e   :  { %624 = vrot.lane.b32.xlu2 %v557_v16, %s1283_s30 }
 0xb7f   :  { %v621_v17 = vpop.permute.xlu1 %620 }
 0xb80   :  { %1135 = vmatmul.msk.f32.vlgmr.msra.gmra.mxu2 %vm28_vm4, %v621_v17 }
 0xb88   :  { %v625_v18 = vpop.permute.xlu2 %624 }
 0xb89   :  { %v627_v19 = vsel %vm28_vm4, %v621_v17, %v625_v18 }
 0xb8a   :  { %1133 = vmatmul.msk.f32.vlgmr.msrb.gmra.mxu0 %vm107_vm5, %v627_v19 }
 0xc03   :  { %v708_v23 = vpop.f32.mrf.mxu2 }
 0xc04   :  { %v711_v25 = vadd.f32 %v708_v23, %v688_v21 }
 0xc06   :  { %1225 = vtanh.f32 %v711_v25  ;;  %v1136_v24 = vmul.f32 -1.442695, %v711_v25 }
 0xc07   :  { %v648_v27 = vpop.f32.mrf.mxu0 }
 0xc08   :  { %v649_v36 = vadd.f32 %v1456_v40, %v648_v27 }
 0xc0a   :  { %1227 = vtanh.f32 %v649_v36  ;;  %v1134_v26 = vmul.f32 -1.442695, %v649_v36 }
 0xc0b   :  { %1229 = vpow2.f32 %v1136_v24 }
 0xc0c   :  { %v1226_v22 = vpop.eup %1225  ;;  %1231 = vpow2.f32 %v1134_v26 }
 0xc0d   :  { %734 = vrot.lane.b32.xlu1 %v1226_v22, %s1283_s30 }
 0xc10   :  { %v1228_v38 = vpop.eup %1227 }
 0xc11   :  { %673 = vrot.lane.b32.xlu0 %v1228_v38, %s1283_s30  ;;  %v1230_v35 = vpop.eup %1229 }
 0xc12   :  { %v715_v39 = vadd.f32 1.0, %v1230_v35  ;;  %v1232_v41 = vpop.eup %1231 }
 0xc13   :  { %v654_v20 = vadd.f32 1.0, %v1232_v41 }
 0xc14   :  { %1233 = vrcp.f32 %v715_v39  ;;  %v727_v0 = vand.u32 2147483648, %v715_v39  ;;  %vm721_vm11 = vweird.f32 %v715_v39  ;;  %v725_v1 = vand.u32 2147483647, %v715_v39 }
 0xc15   :  { %1235 = vrcp.f32 %v654_v20  ;;  %v666_v44 = vand.u32 2147483648, %v654_v20  ;;  %vm660_vm15 = vweird.f32 %v654_v20  ;;  %v664_v45 = vand.u32 2147483647, %v654_v20 }
 0xc16   :  { %v728_v43 = vor.u32 1.1754944e-38, %v727_v0  ;;  %vm726_vm14 = vcmp.eq.f32.partialorder %v725_v1, 8.507059e+37 }
 0xc17   :  { %v667_v50 = vor.u32 1.1754944e-38, %v666_v44  ;;  %vm665_vm1 = vcmp.eq.f32.partialorder %v664_v45, 8.507059e+37 }
 0xc1a   :  { %v1234_v28 = vpop.eup %1233 }
 0xc1b   :  { %v717_v29 = vmul.f32 %v1234_v28, %v715_v39  ;;  %v1236_v30 = vpop.eup %1235  ;;  %vm722_vm10 = vweird.f32 %v1234_v28 }
 0xc1c   :  { %v656_v32 = vmul.f32 %v1236_v30, %v654_v20  ;;  %vm723_vm12 = vmor %vm721_vm11, %vm722_vm10  ;;  %vm661_vm13 = vweird.f32 %v1236_v30 }
 0xc1d   :  { %v718_v31 = vsub.f32 1.0, %v717_v29  ;;  %vm662_vm0 = vmor %vm660_vm15, %vm661_vm13 }
 0xc1e   :  { %v657_v34 = vsub.f32 1.0, %v656_v32 }
 0xc1f   :  { %v719_v33 = vmul.f32 %v1234_v28, %v718_v31 }
 0xc20   :  { %v658_v42 = vmul.f32 %v1236_v30, %v657_v34 }
 0xc21   :  { %v720_v37 = vadd.f32 %v1234_v28, %v719_v33 }
 0xc22   :  { %v659_v3 = vadd.f32 %v1236_v30, %v658_v42 }
 0xc23   :  { %v724_v2 = vsel %vm723_vm12, %v1234_v28, %v720_v37 }
 0xc24   :  { %v729_v47 = vsel %vm726_vm14, %v728_v43, %v724_v2  ;;  %v663_v49 = vsel %vm662_vm0, %v1236_v30, %v659_v3 }
 0xc25   :  { %v668_v52 = vsel %vm665_vm1, %v667_v50, %v663_v49  ;;  %v732_v58 = vmul.f32 %v729_v47, %v1571_v7 }
 0xc26   :  { %v671_v54 = vmul.f32 %v668_v52, %v1575_v11 }
 0xc7f   :  { %v735_v46 = vpop.permute.xlu1 %734 }
 0xc80   :  { %v737_v48 = vmul.f32 %v735_v46, %v729_v47 }
 0xc82   :  { %739 = vrot.lane.b32.xlu0 %v737_v48, %s1284_s7 }
 0xc83   :  { %v674_v51 = vpop.permute.xlu0 %673 }
 0xc84   :  { %v676_v53 = vmul.f32 %v674_v51, %v668_v52 }
 0xc86   :  { %678 = vrot.lane.b32.xlu2 %v676_v53, %s1284_s7 }
 0xce0   :  { %v679_v55 = vpop.permute.xlu2 %678 }
 0xce1   :  { %v1594_v56 = vadd.f32 %v679_v55, %v671_v54 }
 0xce3   :  { %1237 = vtanh.f32 %v1594_v56 }
 0xce9   :  { %v1238_v57 = vpop.eup %1237 }
 0xcea   :  { %684 = vrot.lane.b32.xlu1 %v1238_v57, %s1283_s30  ;;  %v948_v57 = vld [vmem:[%s1677_s0 + $0x38] sm:$0xff] }
 0xcf4   :  { %v740_v59 = vpop.permute.xlu0 %739 }
 0xcf5   :  { %v1599_v60 = vadd.f32 %v740_v59, %v732_v58 }
 0xcf7   :  { %1239 = vtanh.f32 %v1599_v60 }
 0xcfd   :  { %v1240_v61 = vpop.eup %1239 }
 0xcfe   :  { %745 = vrot.lane.b32.xlu2 %v1240_v61, %s1283_s30 }
 0xd58   :  { %v746_v62 = vpop.permute.xlu2 %745 }
 0xd59   :  { %v748_v63 = vmul.f32 %v746_v62, %v729_v47  ;;  %v1638_v62 = vld [vmem:[%s1679_s3] ss:$0 sm:$0xff] }
 0xd5b   :  { %750 = vrot.lane.b32.xlu0 %v748_v63, %s1284_s7 }
 0xd5c   :  { %v685_v4 = vpop.permute.xlu1 %684 }
 0xd5d   :  { %v687_v5 = vmul.f32 %v685_v4, %v668_v52 }
 0xd5f   :  { %754 = vrot.lane.b32.xlu1 %v687_v5, %s1283_s30 }
 0xdcd   :  { %v751_v6 = vpop.permute.xlu0 %750 }
 0xdce   :  { %1139 = vmatmul.msk.f32.vlgmr.msra.gmra.mxu1 %vm28_vm4, %v751_v6 }
 0xdd1   :  { %v755_v7 = vpop.permute.xlu1 %754 }
 0xdd2   :  { %v757_v8 = vsel %vm28_vm4, %v751_v6, %v755_v7 }
 0xdd3   :  { %1137 = vmatmul.msk.f32.vlgmr.msra.gmra.mxu3 %vm107_vm5, %v757_v8 }
 0xe4b   :  { %v838_v10 = vpop.f32.mrf.mxu1 }
 0xe4c   :  { %v841_v11 = vadd.f32 %v838_v10, %v818_v9 }
 0xe4e   :  { %1241 = vtanh.f32 %v841_v11  ;;  %v1140_v18 = vmul.f32 -1.442695, %v841_v11 }
 0xe54   :  { %v1242_v12 = vpop.eup %1241 }
 0xe55   :  { %864 = vrot.lane.b32.xlu0 %v1242_v12, %s1283_s30 }
 0xe56   :  { %v778_v13 = vpop.f32.mrf.mxu3 }
 0xe57   :  { %v779_v14 = vadd.f32 %v1456_v40, %v778_v13 }
 0xe59   :  { %1243 = vtanh.f32 %v779_v14  ;;  %v1138_v16 = vmul.f32 -1.442695, %v779_v14 }
 0xe5b   :  { %1245 = vpow2.f32 %v1138_v16 }
 0xe5c   :  { %1247 = vpow2.f32 %v1140_v18 }
 0xe5f   :  { %v1244_v15 = vpop.eup %1243 }
 0xe60   :  { %803 = vrot.lane.b32.xlu2 %v1244_v15, %s1283_s30 }
 0xe61   :  { %v1246_v17 = vpop.eup %1245 }
 0xe62   :  { %v784_v19 = vadd.f32 1.0, %v1246_v17  ;;  %v1248_v21 = vpop.eup %1247 }
 0xe63   :  { %v845_v25 = vadd.f32 1.0, %v1248_v21 }
 0xe64   :  { %1249 = vrcp.f32 %v784_v19  ;;  %v796_v26 = vand.u32 2147483648, %v784_v19  ;;  %vm790_vm3 = vweird.f32 %v784_v19  ;;  %v794_v35 = vand.u32 2147483647, %v784_v19 }
 0xe65   :  { %1251 = vrcp.f32 %v845_v25  ;;  %v857_v33 = vand.u32 2147483648, %v845_v25  ;;  %vm851_vm9 = vweird.f32 %v845_v25  ;;  %v855_v34 = vand.u32 2147483647, %v845_v25 }
 0xe66   :  { %v797_v20 = vor.u32 1.1754944e-38, %v796_v26  ;;  %vm795_vm7 = vcmp.eq.f32.partialorder %v794_v35, 8.507059e+37 }
 0xe67   :  { %v858_v42 = vor.u32 1.1754944e-38, %v857_v33  ;;  %vm856_vm11 = vcmp.eq.f32.partialorder %v855_v34, 8.507059e+37 }
 0xe6a   :  { %v1250_v23 = vpop.eup %1249 }
 0xe6b   :  { %v786_v27 = vmul.f32 %v1250_v23, %v784_v19  ;;  %v1252_v38 = vpop.eup %1251  ;;  %vm791_vm2 = vweird.f32 %v1250_v23 }
 0xe6c   :  { %v847_v24 = vmul.f32 %v1252_v38, %v845_v25  ;;  %vm792_vm6 = vmor %vm790_vm3, %vm791_vm2  ;;  %vm852_vm8 = vweird.f32 %v1252_v38 }
 0xe6d   :  { %v787_v36 = vsub.f32 1.0, %v786_v27  ;;  %vm853_vm10 = vmor %vm851_vm9, %vm852_vm8 }
 0xe6e   :  { %v848_v41 = vsub.f32 1.0, %v847_v24 }
 0xe6f   :  { %v788_v22 = vmul.f32 %v1250_v23, %v787_v36 }
 0xe70   :  { %v849_v31 = vmul.f32 %v1252_v38, %v848_v41 }
 0xe71   :  { %v789_v40 = vadd.f32 %v1250_v23, %v788_v22 }
 0xe72   :  { %v850_v32 = vadd.f32 %v1252_v38, %v849_v31 }
 0xe73   :  { %v793_v39 = vsel %vm792_vm6, %v1250_v23, %v789_v40 }
 0xe74   :  { %v798_v29 = vsel %vm795_vm7, %v797_v20, %v793_v39  ;;  %v854_v37 = vsel %vm853_vm10, %v1252_v38, %v850_v32 }
 0xe75   :  { %v859_v1 = vsel %vm856_vm11, %v858_v42, %v854_v37  ;;  %v801_v46 = vmul.f32 %v798_v29, %v1594_v56 }
 0xe76   :  { %v862_v3 = vmul.f32 %v859_v1, %v1599_v60 }
 0xeba   :  { %v804_v28 = vpop.permute.xlu2 %803 }
 0xebb   :  { %v806_v30 = vmul.f32 %v804_v28, %v798_v29 }
 0xebd   :  { %808 = vrot.lane.b32.xlu1 %v806_v30, %s1284_s7 }
 0xec7   :  { %v865_v0 = vpop.permute.xlu0 %864 }
 0xec8   :  { %v867_v2 = vmul.f32 %v865_v0, %v859_v1 }
 0xeca   :  { %869 = vrot.lane.b32.xlu2 %v867_v2, %s1284_s7 }
 0xf24   :  { %v870_v43 = vpop.permute.xlu2 %869 }
 0xf25   :  { %v1617_v44 = vadd.f32 %v870_v43, %v862_v3 }
 0xf27   :  { %1253 = vtanh.f32 %v1617_v44 }
 0xf2d   :  { %v1254_v45 = vpop.eup %1253 }
 0xf2e   :  { %875 = vrot.lane.b32.xlu1 %v1254_v45, %s1283_s30 }
 0xf2f   :  { %v809_v47 = vpop.permute.xlu1 %808 }
 0xf30   :  { %v1622_v48 = vadd.f32 %v809_v47, %v801_v46 }
 0xf32   :  { %1255 = vtanh.f32 %v1622_v48 }
 0xf38   :  { %v1256_v49 = vpop.eup %1255 }
 0xf39   :  { %814 = vrot.lane.b32.xlu0 %v1256_v49, %s1283_s30 }
 0xfa0   :  { %v876_v50 = vpop.permute.xlu1 %875 }
 0xfa1   :  { %v878_v51 = vmul.f32 %v876_v50, %v859_v1 }
 0xfa3   :  { %880 = vrot.lane.b32.xlu2 %v878_v51, %s1284_s7 }
 0xfab   :  { %v815_v52 = vpop.permute.xlu0 %814 }
 0xfac   :  { %v817_v53 = vmul.f32 %v815_v52, %v798_v29 }
 0xfae   :  { %884 = vrot.lane.b32.xlu0 %v817_v53, %s1283_s30 }
 0xffd   :  { %v881_v54 = vpop.permute.xlu2 %880 }
 0xffe   :  { %1143 = vmatmul.msk.f32.vlgmr.msra.gmra.mxu0 %vm28_vm4, %v881_v54 }
0x1020   :  { %v885_v55 = vpop.permute.xlu0 %884 }
0x1021   :  { %v887_v56 = vsel %vm28_vm4, %v881_v54, %v885_v55 }
0x1022   :  { %1141 = vmatmul.msk.f32.vlgmr.msrb.gmra.mxu2 %vm107_vm5, %v887_v56 }
0x107b   :  { %v968_v58 = vpop.f32.mrf.mxu0 }
0x107c   :  { %v971_v59 = vadd.f32 %v968_v58, %v948_v57 }
0x107e   :  { %1257 = vtanh.f32 %v971_v59  ;;  %v1144_v5 = vmul.f32 -1.442695, %v971_v59 }
0x1084   :  { %v1258_v60 = vpop.eup %1257 }
0x1085   :  { %994 = vrot.lane.b32.xlu2 %v1258_v60, %s1283_s30 }
0x10a5   :  { %v908_v61 = vpop.f32.mrf.mxu2 }
0x10a6   :  { %v909_v63 = vadd.f32 %v1638_v62, %v908_v61 }
0x10a8   :  { %1259 = vtanh.f32 %v909_v63  ;;  %v1142_v21 = vmul.f32 -1.442695, %v909_v63 }
0x10a9   :  { %1261 = vpow2.f32 %v1144_v5 }
0x10ae   :  { %v1260_v4 = vpop.eup %1259 }
0x10af   :  { %933 = vrot.lane.b32.xlu1 %v1260_v4, %s1283_s30  ;;  %v1262_v6 = vpop.eup %1261 }
0x10b0   :  { %v975_v7 = vadd.f32 1.0, %v1262_v6 }
0x10b2   :  { %1263 = vrcp.f32 %v975_v7  ;;  %v987_v13 = vand.u32 2147483648, %v975_v7  ;;  %vm981_vm13 = vweird.f32 %v975_v7  ;;  %v985_v14 = vand.u32 2147483647, %v975_v7 }
0x10b3   :  { %1265 = vpow2.f32 %v1142_v21 }
0x10b4   :  { %v988_v16 = vor.u32 1.1754944e-38, %v987_v13  ;;  %vm986_vm15 = vcmp.eq.f32.partialorder %v985_v14, 8.507059e+37 }
0x10b8   :  { %v1264_v8 = vpop.eup %1263 }
0x10b9   :  { %v977_v9 = vmul.f32 %v1264_v8, %v975_v7  ;;  %vm982_vm12 = vweird.f32 %v1264_v8  ;;  %v1266_v23 = vpop.eup %1265 }
0x10ba   :  { %vm983_vm14 = vmor %vm981_vm13, %vm982_vm12  ;;  %v914_v25 = vadd.f32 1.0, %v1266_v23 }
0x10bb   :  { %v978_v10 = vsub.f32 1.0, %v977_v9  ;;  %v1080_v9 = vld [vmem:[%s1680_s4 + $0x10] sm:$0xff] }
0x10bc   :  { %1267 = vrcp.f32 %v914_v25  ;;  %v926_v24 = vand.u32 2147483648, %v914_v25  ;;  %vm920_vm1 = vweird.f32 %v914_v25  ;;  %v924_v26 = vand.u32 2147483647, %v914_v25 }
0x10bd   :  { %v979_v11 = vmul.f32 %v1264_v8, %v978_v10  ;;  %v1079_v10 = vld [vmem:[%s1680_s4 + $0x8] sm:$0xff] }
0x10be   :  { %v927_v39 = vor.u32 1.1754944e-38, %v926_v24  ;;  %vm925_vm3 = vcmp.eq.f32.partialorder %v924_v26, 8.507059e+37 }
0x10bf   :  { %v980_v12 = vadd.f32 %v1264_v8, %v979_v11  ;;  %v1078_v11 = vld [vmem:[%s1680_s4] sm:$0xff] }
0x10c1   :  { %v984_v15 = vsel %vm983_vm14, %v1264_v8, %v980_v12  ;;  %v1081_v8 = vld [vmem:[%s1680_s4 + $0x18] sm:$0xff] }
0x10c2   :  { %v989_v18 = vsel %vm986_vm15, %v988_v16, %v984_v15  ;;  %v1268_v27 = vpop.eup %1267  ;;  %1103 = vmatpush.msrb.mxu3 %v1081_v8  ;;  %v1152_v15 = vld [vmem:[%s1681_s5] ss:$0 sm:$0xff] }
0x10c3   :  { %v916_v36 = vmul.f32 %v1268_v27, %v914_v25  ;;  %vm921_vm0 = vweird.f32 %v1268_v27  ;;  %v992_v29 = vmul.f32 %v989_v18, %v1617_v44 }
0x10c4   :  { %vm922_vm2 = vmor %vm920_vm1, %vm921_vm0  ;;  %1104 = vmatpush.msrb.mxu3 %v1080_v9 }
0x10c5   :  { %v917_v22 = vsub.f32 1.0, %v916_v36 }
0x10c6   :  { %1105 = vmatpush.msrb.mxu3 %v1079_v10 }
0x10c7   :  { %v918_v38 = vmul.f32 %v1268_v27, %v917_v22 }
0x10c8   :  { %1106 = vmatpush.msrb.mxu3 %v1078_v11 }
0x10c9   :  { %v919_v40 = vadd.f32 %v1268_v27, %v918_v38 }
0x10cb   :  { %v923_v35 = vsel %vm922_vm2, %v1268_v27, %v919_v40 }
0x10cc   :  { %v928_v20 = vsel %vm925_vm3, %v927_v39, %v923_v35 }
0x10cd   :  { %v931_v33 = vmul.f32 %v928_v20, %v1622_v48 }
0x10df   :  { %v995_v17 = vpop.permute.xlu2 %994 }
0x10e0   :  { %v997_v19 = vmul.f32 %v995_v17, %v989_v18 }
0x10e2   :  { %999 = vrot.lane.b32.xlu1 %v997_v19, %s1284_s7 }
0x1121   :  { %v934_v41 = vpop.permute.xlu1 %933 }
0x1122   :  { %v936_v28 = vmul.f32 %v934_v41, %v928_v20 }
0x1124   :  { %938 = vrot.lane.b32.xlu0 %v936_v28, %s1284_s7 }
0x1154   :  { %v1000_v30 = vpop.permute.xlu1 %999 }
0x1155   :  { %v1002_v31 = vadd.f32 %v1000_v30, %v992_v29 }
0x1157   :  { %1269 = vtanh.f32 %v1002_v31 }
0x115d   :  { %v1270_v32 = vpop.eup %1269 }
0x115e   :  { %1005 = vrot.lane.b32.xlu0 %v1270_v32, %s1283_s30 }
0x1196   :  { %v939_v34 = vpop.permute.xlu0 %938 }
0x1197   :  { %v941_v37 = vadd.f32 %v939_v34, %v931_v33 }
0x1199   :  { %1271 = vtanh.f32 %v941_v37 }
0x119f   :  { %v1272_v42 = vpop.eup %1271 }
0x11a0   :  { %944 = vrot.lane.b32.xlu2 %v1272_v42, %s1283_s30 }
0x11d0   :  { %v1006_v0 = vpop.permute.xlu0 %1005 }
0x11d1   :  { %v1008_v1 = vmul.f32 %v1006_v0, %v989_v18 }
0x11d3   :  { %1010 = vrot.lane.b32.xlu1 %v1008_v1, %s1284_s7 }
0x11fa   :  { %v945_v2 = vpop.permute.xlu2 %944 }
0x11fb   :  { %v947_v3 = vmul.f32 %v945_v2, %v928_v20 }
0x11fd   :  { %1014 = vrot.lane.b32.xlu2 %v947_v3, %s1283_s30 }
0x1245   :  { %v1011_v43 = vpop.permute.xlu1 %1010 }
0x1257   :  { %v1015_v44 = vpop.permute.xlu2 %1014 }
0x1258   :  { %v1017_v45 = vsel %vm28_vm4, %v1011_v43, %v1015_v44 }
0x1259   :  { %1145 = vmatmul.msk.f32.vlgmr.msrb.gmra.mxu1 %vm107_vm5, %v1017_v45 }
0x12d6   :  { %v1038_v46 = vpop.f32.mrf.mxu1 }
0x12d7   :  { %v1039_v47 = vadd.f32 %v1638_v62, %v1038_v46 }
0x12d9   :  { %1273 = vtanh.f32 %v1039_v47  ;;  %v1146_v49 = vmul.f32 -1.442695, %v1039_v47 }
0x12db   :  { %1275 = vpow2.f32 %v1146_v49 }
0x12df   :  { %v1274_v48 = vpop.eup %1273 }
0x12e0   :  { %1063 = vrot.lane.b32.xlu0 %v1274_v48, %s1283_s30 }
0x12e1   :  { %v1276_v50 = vpop.eup %1275 }
0x12e2   :  { %v1044_v51 = vadd.f32 1.0, %v1276_v50 }
0x12e4   :  { %1277 = vrcp.f32 %v1044_v51  ;;  %v1056_v57 = vand.u32 2147483648, %v1044_v51  ;;  %vm1050_vm5 = vweird.f32 %v1044_v51  ;;  %v1054_v58 = vand.u32 2147483647, %v1044_v51 }
0x12e6   :  { %v1057_v60 = vor.u32 1.1754944e-38, %v1056_v57  ;;  %vm1055_vm8 = vcmp.eq.f32.partialorder %v1054_v58, 8.507059e+37 }
0x12ea   :  { %v1278_v52 = vpop.eup %1277 }
0x12eb   :  { %v1046_v53 = vmul.f32 %v1278_v52, %v1044_v51  ;;  %vm1051_vm6 = vweird.f32 %v1278_v52 }
0x12ec   :  { %vm1052_vm7 = vmor %vm1050_vm5, %vm1051_vm6 }
0x12ed   :  { %v1047_v54 = vsub.f32 1.0, %v1046_v53 }
0x12ef   :  { %v1048_v55 = vmul.f32 %v1278_v52, %v1047_v54 }
0x12f1   :  { %v1049_v56 = vadd.f32 %v1278_v52, %v1048_v55 }
0x12f3   :  { %v1053_v59 = vsel %vm1052_vm7, %v1278_v52, %v1049_v56 }
0x12f4   :  { %v1058_v62 = vsel %vm1055_vm8, %v1057_v60, %v1053_v59 }
0x12f5   :  { %v1061_v4 = vmul.f32 %v1058_v62, %v941_v37 }
0x1352   :  { %v1064_v61 = vpop.permute.xlu0 %1063 }
0x1353   :  { %v1066_v63 = vmul.f32 %v1064_v61, %v1058_v62 }
0x1355   :  { %1068 = vrot.lane.b32.xlu1 %v1066_v63, %s1284_s7 }
0x13c7   :  { %v1069_v5 = vpop.permute.xlu1 %1068 }
0x13c8   :  { %v1071_v6 = vadd.f32 %v1069_v5, %v1061_v4 }
0x13ca   :  { %1279 = vtanh.f32 %v1071_v6 }
0x13d0   :  { %v1280_v7 = vpop.eup %1279 }
0x13d1   :  { %1074 = vrot.lane.b32.xlu2 %v1280_v7, %s1283_s30 }
0x142b   :  { %v1075_v12 = vpop.permute.xlu2 %1074 }
0x142c   :  { %v1077_v13 = vmul.f32 %v1075_v12, %v1058_v62 }
0x142e   :  { %1087 = vrot.lane.b32.xlu0 %v1077_v13, %s1284_s7 }
0x14a0   :  { %v1088_v14 = vpop.permute.xlu0 %1087 }
0x14a1   :  { %1147 = vmatmul.msk.f32.vlgmr.msrb.gmra.mxu3 %vm28_vm4, %v1088_v14 }
0x1524   :  { %v1108_v16 = vpop.f32.mrf.mxu3 }
0x1525   :  { %v1109_v17 = vadd.f32 %v1152_v15, %v1108_v16 }
0x1527   :  { %1111 = vst [vmem:[%s1682_s6] sm:$0xff] %v1109_v17 }

</bundles_post_ra>
